<compile_context>
chip_gen: v7x
topology: tpu7x:2x2x1
jax: 0.10.0
libtpu: 0.0.40
codegen_flags: <defaults>
</compile_context>

<pallas_src>
import functools

import jax
import jax.numpy as jnp
from jax import lax
from jax.experimental import pallas as pl
from jax.experimental.pallas import tpu as pltpu

_LANE = 128
_SUBLANE = 8


def _round_up(x, m):
    return ((x + m - 1) // m) * m


def _vmem_capacity_bytes():
    """Generation-aware VMEM capacity; conservative 64 MiB fallback (v7x)."""
    try:
        info = pltpu.get_tpu_info()
        cap = int(getattr(info, "vmem_capacity_bytes", 0) or 0)
        if cap > 0:
            return cap
    except Exception:
        pass
    return 64 * 1024 * 1024


# ----------------------------- Pallas kernel --------------------------------

def _dcn_kernel(v_ref, w_ref, bmat_ref, wmat_ref, bias_ref, out_ref):
    """One tile of P rows.

    v_ref    : (TP, D4)         gathered corner values (bf16 by default)
    w_ref    : (TP, 4*K2)       per-tap bilinear weights * sigmoid(mask)
    bmat_ref : (4*K2, D4)       constant 0/1 "repeat each column in_C times"
    wmat_ref : (D4, out_C_pad)  reshaped dcn_weight (corner-replicated, lane-padded)
    bias_ref : (1, out_C_pad)   dcn bias (zeros if None), f32, lane-padded
    out_ref  : (TP, out_C_pad)  f32
    """
    # Broadcast the per-tap weights across channels with a tiny MXU matmul
    # (avoids layout-changing reshapes/repeats on the VPU/XLU).
    wb = jnp.dot(w_ref[...], bmat_ref[...], preferred_element_type=jnp.float32)
    value = wb * v_ref[...].astype(jnp.float32)
    # Main matmul; the sum over the 4 bilinear corners is folded into wmat
    # (rows replicated 4x).  bf16 MXU inputs by default, f32 accumulation.
    value = value.astype(wmat_ref.dtype)
    acc = jnp.dot(value, wmat_ref[...], preferred_element_type=jnp.float32)
    out_ref[...] = (acc + bias_ref[...]).astype(out_ref.dtype)


# ----------------------------- tiling helpers --------------------------------

def _vmem_bytes(tile_p, d4, k4, out_cp, stream_b, const_b):
    # double-buffered streamed blocks (V, weights, out) + resident constants
    # (also counted double-buffered: their constant index_map keeps them
    # resident, but BlockSpec still allocates 2 buffers).
    stream = tile_p * (stream_b * _round_up(d4, _LANE)
                       + stream_b * _round_up(k4, _LANE)
                       + 4 * _round_up(out_cp, _LANE))
    consts = (const_b * _round_up(k4, 2 * _SUBLANE) * _round_up(d4, _LANE)
              + const_b * _round_up(d4, 2 * _SUBLANE) * _round_up(out_cp, _LANE)
              + 4 * _SUBLANE * _round_up(out_cp, _LANE))
    return 2 * stream + 2 * consts


def _choose_tile_p(P, target):
    """Row-tile choice: prefer tiles that (a) divide P (no padding of the big
    streamed inputs), (b) give >= 4 grid steps so the 'parallel' grid axis can
    shard across v7x's two TensorCores with >= 2 pipelined steps per core, and
    (c) are a multiple of 16 (bf16 sublane packing), falling back to 8."""
    for q in (16, _SUBLANE):
        top = min(target, P)
        top -= top % q
        if top < q:
            continue
        best = {}
        for tp in range(top, q - 1, -q):
            if P % tp == 0:
                steps = P // tp
                for ms in (4, 2, 1):
                    if steps >= ms and ms not in best:
                        best[ms] = tp
        for ms in (4, 2, 1):
            if ms in best:
                return best[ms], P
    # Ragged P: pad only the two row-streamed inputs (padded rows get zero
    # weights, contribute nothing and are sliced off afterwards).
    q = 16
    tp = min(_round_up(P, q), max(q, (target // q) * q))
    return tp, _round_up(P, tp)


def _dcn_matmul(v, wpack, bmat, wmat, bias_row, *, tile_target=2048):
    P, D4 = v.shape
    K4 = wpack.shape[1]
    out_Cp = wmat.shape[1]
    stream_b = jnp.dtype(v.dtype).itemsize
    const_b = jnp.dtype(wmat.dtype).itemsize

    # Generation-aware VMEM sizing: ~96 MiB budget on v5e/v6e (128 MiB VMEM),
    # ~48 MiB on v7x (64 MiB VMEM).
    cap = _vmem_capacity_bytes()
    budget = max(40 << 20, (cap * 3) // 4)
    limit = min(cap, max(24 << 20, min(cap - (12 << 20), budget + (16 << 20))))
    budget = min(budget, limit)

    target = tile_target
    while target > _SUBLANE and _vmem_bytes(target, D4, K4, out_Cp,
                                            stream_b, const_b) > budget:
        target //= 2
    tile_p, P_pad = _choose_tile_p(P, target)

    if P_pad != P:
        v = jnp.pad(v, ((0, P_pad - P), (0, 0)))
        wpack = jnp.pad(wpack, ((0, P_pad - P), (0, 0)))

    need = _vmem_bytes(tile_p, D4, K4, out_Cp, stream_b, const_b)
    vmem_limit = int(min(limit, max(32 << 20, need + (12 << 20))))

    # Advisory cost estimate so XLA overlaps the producer ops with the kernel.
    flops = 2 * P_pad * K4 * D4 + 2 * P_pad * D4 * out_Cp + P_pad * D4
    bytes_accessed = (P_pad * (D4 + K4) * stream_b + P_pad * out_Cp * 4
                      + K4 * D4 * const_b + D4 * out_Cp * const_b + out_Cp * 4)

    # TODO(synk): mark the three constant inputs single-buffered
    # (pipeline_mode=pl.Buffered(1)) once the top-level pallas_call pipeline
    # honors it; for now their double-buffer cost is accounted in _vmem_bytes.
    out = pl.pallas_call(
        _dcn_kernel,
        out_shape=jax.ShapeDtypeStruct((P_pad, out_Cp), jnp.float32),
        grid=(P_pad // tile_p,),
        in_specs=[
            pl.BlockSpec((tile_p, D4), lambda i: (i, 0)),     # corner values (streamed)
            pl.BlockSpec((tile_p, K4), lambda i: (i, 0)),     # packed weights (streamed)
            pl.BlockSpec((K4, D4), lambda i: (0, 0)),         # broadcast matrix (resident)
            pl.BlockSpec((D4, out_Cp), lambda i: (0, 0)),     # dcn weight (resident)
            pl.BlockSpec((1, out_Cp), lambda i: (0, 0)),      # bias (resident)
        ],
        out_specs=pl.BlockSpec((tile_p, out_Cp), lambda i: (i, 0)),
        compiler_params=pltpu.CompilerParams(
            dimension_semantics=("parallel",),
            vmem_limit_bytes=vmem_limit),
        cost_estimate=pl.CostEstimate(flops=int(flops), transcendentals=0,
                                      bytes_accessed=int(bytes_accessed)),
    )(v, wpack, bmat, wmat, bias_row)
    return out[:P]


# ------------------------------ forward pass --------------------------------

def dcnv2_forward(x, conv_offset_w, conv_offset_b, dcn_weight, dcn_bias,
                  stride, padding, *, compute_dtype=jnp.bfloat16,
                  tile_target=2048):
    x = x.astype(jnp.float32)
    N, in_C, H, W = x.shape
    out_C, _, kH, kW = dcn_weight.shape
    K2 = kH * kW

    # conv_offset: plain dense conv, stays in XLA (f32).
    offset_mask = lax.conv_general_dilated(
        x, conv_offset_w.astype(jnp.float32), window_strides=(stride, stride),
        padding=[(padding, padding), (padding, padding)],
        dimension_numbers=('NCHW', 'OIHW', 'NCHW'))
    offset_mask = offset_mask + conv_offset_b[None, :, None, None]
    offset = offset_mask[:, :2 * K2]                 # (y, x) interleaved per tap
    mask = jax.nn.sigmoid(offset_mask[:, 2 * K2:])

    # NOTE: formulas below intentionally match the reference module exactly,
    # including its stride>1 output-size quirk and half_H computed from kW.
    out_W = (W + 2 * padding - (kW - 1)) // stride
    out_H = (H + 2 * padding - (kH - 1)) // stride
    pad_x_H = H + 2 * padding + 1
    pad_x_W = W + 2 * padding + 1

    # zero-padded input, NHWC, stored in compute_dtype so the 36x-expanded
    # corner stream (the dominant HBM traffic) is bf16 by default.
    pad_x = jnp.zeros((N, pad_x_H, pad_x_W, in_C), dtype=compute_dtype)
    pad_x = pad_x.at[:, padding:padding + H, padding:padding + W, :].set(
        jnp.transpose(x, (0, 2, 3, 1)).astype(compute_dtype))

    # sampling positions (f32 index math).
    xs = jnp.arange(out_W, dtype=jnp.float32) * stride + padding
    ys = jnp.arange(out_H, dtype=jnp.float32) * stride + padding
    half_W = (kW - 1) // 2
    half_H = (kW - 1) // 2                             # matches reference (kW)
    inner_x = jnp.tile(jnp.arange(kW, dtype=jnp.float32) - half_W, kH)     # (K2,)
    inner_y = jnp.repeat(jnp.arange(kH, dtype=jnp.float32) - half_H, kW)   # (K2,)

    offset_nhwc = jnp.transpose(offset, (0, 2, 3, 1)).reshape(N, out_H, out_W, K2, 2)
    off_y = offset_nhwc[..., 0]
    off_x = offset_nhwc[..., 1]
    mask_rows = jnp.transpose(mask, (0, 2, 3, 1)).reshape(N * out_H * out_W, K2)

    pos_y = ys[None, :, None, None] + inner_y[None, None, None, :] + off_y
    pos_x = xs[None, None, :, None] + inner_x[None, None, None, :] + off_x
    pos_y = jnp.clip(pos_y, 0.0, H + 2 * padding - 1.0)
    pos_x = jnp.clip(pos_x, 0.0, W + 2 * padding - 1.0)

    P = N * out_H * out_W
    pos_y = pos_y.reshape(P * K2)
    pos_x = pos_x.reshape(P * K2)
    y1 = jnp.floor(pos_y)
    x1 = jnp.floor(pos_x)

    # ---- single 4-corner gather ---------------------------------------------
    # pad_x rows are (y, x, C)-contiguous, so one (2, 2, in_C) slice per tap
    # fetches all four bilinear corners at once.
    # TODO(synk): move this gather in-kernel (pad_x via memory_space=pl.ANY,
    # (y1, x1) scalar-prefetched to SMEM, per-tap pltpu.make_async_copy into a
    # double-buffered VMEM scratch) to kill the HBM round trip of the expanded
    # (P, K2*4*in_C) array; the per-tap DMAs are too small to win at this
    # module's in_C, so it stays an XLA gather, streamed in bf16 instead.
    pad_x3 = pad_x.reshape(N * pad_x_H, pad_x_W, in_C)
    n_idx = jnp.repeat(jnp.arange(N, dtype=jnp.int32), out_H * out_W * K2)
    y1_flat = n_idx * pad_x_H + y1.astype(jnp.int32)
    starts = jnp.stack([y1_flat, x1.astype(jnp.int32)], axis=-1)   # (P*K2, 2)
    dnums = lax.GatherDimensionNumbers(offset_dims=(1, 2, 3),
                                       collapsed_slice_dims=(),
                                       start_index_map=(0, 1))
    corners = lax.gather(pad_x3, starts, dnums, slice_sizes=(2, 2, in_C),
                         mode=lax.GatherScatterMode.PROMISE_IN_BOUNDS)
    D4 = K2 * 4 * in_C
    v_rows = corners.reshape(P, D4)        # (P, K2*4*in_C): tap, corner, channel

    # per-tap bilinear weights (sigmoid mask folded in), packed as (P, 4*K2).
    # Corner order j = 2*yc + xc: (y1,x1), (y1,x2), (y2,x1), (y2,x2).
    lh = (pos_y - y1).reshape(P, K2)
    lw = (pos_x - x1).reshape(P, K2)
    hh = 1.0 - lh
    hw = 1.0 - lw
    w_corners = jnp.stack([hh * hw, hh * lw, lh * hw, lh * lw], axis=-1)  # (P,K2,4)
    wpack = (w_corners * mask_rows[..., None]).reshape(P, 4 * K2)
    wpack = wpack.astype(compute_dtype)

    # constant broadcast matrix: repeats each per-tap weight across in_C lanes.
    bmat = jnp.repeat(jnp.eye(4 * K2, dtype=jnp.float32), in_C,
                      axis=1).astype(compute_dtype)                      # (4K2, D4)

    # dcn_weight (out_C, in_C, kH, kW) -> (D4, out_C); rows replicated over the
    # 4 corners so the corner sum is folded into the main matmul.
    w_kco = jnp.transpose(dcn_weight.astype(jnp.float32).reshape(out_C, in_C, K2),
                          (2, 1, 0))                                      # (K2,in_C,out_C)
    wmat = jnp.broadcast_to(w_kco[:, None, :, :],
                            (K2, 4, in_C, out_C)).reshape(D4, out_C)

    # lane-dense output: pad out_C (and bias) up to a multiple of 128.
    out_Cp = _round_up(out_C, _LANE)
    wmat = jnp.pad(wmat, ((0, 0), (0, out_Cp - out_C))).astype(compute_dtype)
    bias = (jnp.zeros((out_C,), jnp.float32) if dcn_bias is None
            else dcn_bias.astype(jnp.float32))
    bias_row = jnp.pad(bias, (0, out_Cp - out_C)).reshape(1, out_Cp)

    out_flat = _dcn_matmul(v_rows, wpack, bmat, wmat, bias_row,
                           tile_target=tile_target)
    out = out_flat[:, :out_C].reshape(N, out_H, out_W, out_C)
    return jnp.transpose(out, (0, 3, 1, 2))            # NCHW, like the module


# ------------------------------ parameter init ------------------------------

def init_dcnv2_params(key, input_dim, filters, filter_size, gain=1.0):
    # conv_offset: zero-initialized weight and bias (as in the torch module)
    co_w = jnp.zeros((filter_size * filter_size * 3, input_dim,
                      filter_size, filter_size), jnp.float32)
    co_b = jnp.zeros((filter_size * filter_size * 3,), jnp.float32)
    # dcn_weight: xavier_normal_
    fan_in = input_dim * filter_size * filter_size
    fan_out = filters * filter_size * filter_size
    std = gain * (2.0 / (fan_in + fan_out)) ** 0.5
    dcn_w = std * jax.random.normal(
        key, (filters, input_dim, filter_size, filter_size), jnp.float32)
    return co_w, co_b, dcn_w


# ----------------------------------- main ------------------------------------

if __name__ == "__main__":
    # Module config (bias=False -> dcn_bias is None)
    input_dim, filters, filter_size = 4, 8, 3
    stride, padding = 1, 1

    key = jax.random.PRNGKey(0)
    k_x, k_w = jax.random.split(key)

    x = jax.random.normal(k_x, (2, input_dim, 16, 16), jnp.float32)
    co_w, co_b, dcn_w = init_dcnv2_params(k_w, input_dim, filters, filter_size)

    # sanity reference: conv_offset is zero-init => offsets == 0, mask == 0.5,
    # so DCNv2 degenerates to 0.5 * ordinary conv(x, dcn_weight, stride, pad).
    ref = 0.5 * lax.conv_general_dilated(
        x, dcn_w, window_strides=(stride, stride),
        padding=[(padding, padding), (padding, padding)],
        dimension_numbers=('NCHW', 'OIHW', 'NCHW'))

    # default path: bf16-streamed corners + bf16 MXU (f32 accumulation).
    fwd = jax.jit(functools.partial(dcnv2_forward, stride=stride, padding=padding))
    out = jax.block_until_ready(fwd(x, co_w, co_b, dcn_w, None))
    assert out.shape == ref.shape
    assert jnp.allclose(out, ref, atol=5e-2, rtol=5e-2), \
        f"bf16 max abs err {jnp.max(jnp.abs(out - ref))}"

    # full-f32 variant (exact math check with a tight tolerance)
    fwd_f32 = jax.jit(functools.partial(dcnv2_forward, stride=stride,
                                        padding=padding,
                                        compute_dtype=jnp.float32))
    out_f32 = jax.block_until_ready(fwd_f32(x, co_w, co_b, dcn_w, None))
    assert jnp.allclose(out_f32, ref, atol=1e-3, rtol=1e-3), \
        f"f32 max abs err {jnp.max(jnp.abs(out_f32 - ref))}"

    print("KERNEL_OK")
</pallas_src>

<mosaic_0001>
module attributes {stable_mosaic.version = 11 : i64} {
  func.func @_dcn_kernel(%arg0: i32, %arg1: memref<128x144xbf16, #tpu.memory_space<vmem>>, %arg2: memref<128x36xbf16, #tpu.memory_space<vmem>>, %arg3: memref<36x144xbf16, #tpu.memory_space<vmem>>, %arg4: memref<144x128xbf16, #tpu.memory_space<vmem>>, %arg5: memref<1x128xf32, #tpu.memory_space<vmem>>, %arg6: memref<128x128xf32, #tpu.memory_space<vmem>>) attributes {dimension_semantics = [#tpu.dimension_semantics<parallel>], iteration_bounds = array<i64: 4>, scalar_prefetch = 0 : i64, scratch_operands = 0 : i64, tpu.core_type = #tpu.core_type<tc>, window_params = [{transform_indices = @transform_0, window_bounds = array<i64: 128, 144>}, {transform_indices = @transform_1, window_bounds = array<i64: 128, 36>}, {pipeline_mode = #tpu.pipeline_mode<synchronous>, transform_indices = @transform_2, window_bounds = array<i64: 36, 144>}, {pipeline_mode = #tpu.pipeline_mode<synchronous>, transform_indices = @transform_3, window_bounds = array<i64: 144, 128>}, {pipeline_mode = #tpu.pipeline_mode<synchronous>, transform_indices = @transform_4, window_bounds = array<i64: 1, 128>}, {transform_indices = @transform_5, window_bounds = array<i64: 128, 128>}]} {
    %c0 = arith.constant 0 : index
    %c0_0 = arith.constant 0 : index
    %0 = vector.load %arg2[%c0, %c0_0] : memref<128x36xbf16, #tpu.memory_space<vmem>>, vector<128x36xbf16>
    %c0_1 = arith.constant 0 : index
    %c0_2 = arith.constant 0 : index
    %1 = vector.load %arg3[%c0_1, %c0_2] : memref<36x144xbf16, #tpu.memory_space<vmem>>, vector<36x144xbf16>
    %cst = arith.constant dense<0.000000e+00> : vector<128x144xf32>
    %2 = tpu.matmul %0, %1, %cst {dimension_numbers = #tpu.dot_dimension_numbers<[1], [0], [0], [1], [0, 0, 1, 1], [], []>} : vector<128x36xbf16>, vector<36x144xbf16>, vector<128x144xf32> -> vector<128x144xf32>
    %c0_3 = arith.constant 0 : index
    %c0_4 = arith.constant 0 : index
    %3 = vector.load %arg1[%c0_3, %c0_4] : memref<128x144xbf16, #tpu.memory_space<vmem>>, vector<128x144xbf16>
    %4 = arith.extf %3 : vector<128x144xbf16> to vector<128x144xf32>
    %5 = arith.mulf %2, %4 : vector<128x144xf32>
    %6 = arith.truncf %5 : vector<128x144xf32> to vector<128x144xbf16>
    %c0_5 = arith.constant 0 : index
    %c0_6 = arith.constant 0 : index
    %7 = vector.load %arg4[%c0_5, %c0_6] : memref<144x128xbf16, #tpu.memory_space<vmem>>, vector<144x128xbf16>
    %cst_7 = arith.constant dense<0.000000e+00> : vector<128x128xf32>
    %8 = tpu.matmul %6, %7, %cst_7 {dimension_numbers = #tpu.dot_dimension_numbers<[1], [0], [0], [1], [0, 0, 1, 1], [], []>} : vector<128x144xbf16>, vector<144x128xbf16>, vector<128x128xf32> -> vector<128x128xf32>
    %c0_8 = arith.constant 0 : index
    %c0_9 = arith.constant 0 : index
    %9 = vector.load %arg5[%c0_8, %c0_9] : memref<1x128xf32, #tpu.memory_space<vmem>>, vector<1x128xf32>
    %10 = vector.broadcast %9 : vector<1x128xf32> to vector<128x128xf32>
    %11 = arith.addf %8, %10 : vector<128x128xf32>
    %c0_10 = arith.constant 0 : index
    %c0_11 = arith.constant 0 : index
    %12 = vector.load %arg6[%c0_10, %c0_11] : memref<128x128xf32, #tpu.memory_space<vmem>>, vector<128x128xf32>
    tpu.vector_store %arg6[%c0_10, %c0_11], %11 {strides = array<i32>} : memref<128x128xf32, #tpu.memory_space<vmem>>, vector<128x128xf32>,
    return
  }
  func.func @transform_0(%arg0: i32) -> (i32, i32) {
    %c0_i32 = arith.constant 0 : i32
    %c0_i32_0 = arith.constant 0 : i32
    return %arg0, %c0_i32 : i32, i32
  }
  func.func @transform_1(%arg0: i32) -> (i32, i32) {
    %c0_i32 = arith.constant 0 : i32
    %c0_i32_0 = arith.constant 0 : i32
    return %arg0, %c0_i32 : i32, i32
  }
  func.func @transform_2(%arg0: i32) -> (i32, i32) {
    %c0_i32 = arith.constant 0 : i32
    %c0_i32_0 = arith.constant 0 : i32
    %c0_i32_1 = arith.constant 0 : i32
    return %c0_i32, %c0_i32_0 : i32, i32
  }
  func.func @transform_3(%arg0: i32) -> (i32, i32) {
    %c0_i32 = arith.constant 0 : i32
    %c0_i32_0 = arith.constant 0 : i32
    %c0_i32_1 = arith.constant 0 : i32
    return %c0_i32, %c0_i32_0 : i32, i32
  }
  func.func @transform_4(%arg0: i32) -> (i32, i32) {
    %c0_i32 = arith.constant 0 : i32
    %c0_i32_0 = arith.constant 0 : i32
    %c0_i32_1 = arith.constant 0 : i32
    return %c0_i32, %c0_i32_0 : i32, i32
  }
  func.func @transform_5(%arg0: i32) -> (i32, i32) {
    %c0_i32 = arith.constant 0 : i32
    %c0_i32_0 = arith.constant 0 : i32
    return %arg0, %c0_i32 : i32, i32
  }
}

</mosaic_0001>

<bundles_post_ra>
// kernel: tile.8
= control target key start
LH: loop header
LB: loop body
LE: loop exit
PB: predicated region body
PF: predicated region fallthrough
CT: control target
= control target key end

     0   :  { %s22_s0 = inlined_call_operand.vmem [shape: f32[3], index: 0, kind: input, shape index: {}]   ;;  %s23_s1 = inlined_call_operand.vmem [shape: f32[3,3], index: 1, kind: output, shape index: {}]  }
   0x1   :  { %v4_v0 = vld [vmem:[%s22_s0] ss:$0 sm:$0xff] }
   0x2   :  { %5 = vst [vmem:[%s23_s1] sm:$0xf] %v4_v0 }

// kernel: mul.17
= control target key start
LH: loop header
LB: loop body
LE: loop exit
PB: predicated region body
PF: predicated region fallthrough
CT: control target
= control target key end

     0   :  { %vm52_vm0 = vcmask 1041409   ;;  %vm56_vm1 = vcmask 1042434   ;;  %vm60_vm2 = vcmask 1043459   ;;  %vm64_vm3 = vcmask 1044484   ;;  %s119_s6 = smov 6  ;;  %s83_s15 = smov 3  ;;  %s2668_s0 = inlined_call_operand.vmem [shape: f32[2,16,16,9], index: 0, kind: input, shape index: {}]   ;;  %s2669_s1 = inlined_call_operand.vmem [shape: f32[512,9], index: 1, kind: output, shape index: {}]  }
   0x1   :  { %v1197_v0 = vld [vmem:[%s2668_s0 + $0x11f] sm:$0x1]   ;;  %vm68_vm4 = vcmask 1045509   ;;  %vm72_vm5 = vcmask 1046534   ;;  %vm76_vm6 = vcmask 1047559   ;;  %vm121_vm7 = vcmask 1042433  }
   0x2   :  { %v1198_v1 = vld [vmem:[%s2668_s0 + $0xbe] sm:$0x2]   ;;  %v1179_v6 = vld [vmem:[%s2668_s0 + $0x10f] sm:$0x1]   ;;  %s157_s20 = smov 12  ;;  %s1456_s27 = smov 112  }
   0x3   :  { %v1199_v2 = vld [vmem:[%s2668_s0 + $0xdd] sm:$0x4]   ;;  %v189_v3 = vsel %vm52_vm0, %v1198_v1, %v1197_v0  ;;  %v1181_v10 = vld [vmem:[%s2668_s0 + $0x34] sm:$0x8]   ;;  %v1171_v16 = vld [vmem:[%s2668_s0 + $0x2d] sm:$0x4]  }
   0x4   :  { %v1200_v4 = vld [vmem:[%s2668_s0 + $0xfc] sm:$0x8]   ;;  %v193_v5 = vsel %vm56_vm1, %v1199_v2, %v189_v3  ;;  %v1182_v11 = vld [vmem:[%s2668_s0 + $0x53] sm:$0x10]   ;;  %v1172_v19 = vld [vmem:[%s2668_s0 + $0x4c] sm:$0x8]  }
   0x5   :  { %v1180_v7 = vld [vmem:[%s2668_s0 + $0x1c7] ss:$-216 sm:%s119_s6]   ;;  %v197_v8 = vsel %vm60_vm2, %v1200_v4, %v193_v5  ;;  %vm159_vm8 = vcmask 1043458   ;;  %v1203_v55 = vld [vmem:[%s2668_s0 + $0x6] sm:$0x1]   ;;  %s240_s7 = smov 3 }
   0x6   :  { %v122_v9 = vsel %vm121_vm7, %v1180_v7, %v1179_v6  ;;  %v1183_v12 = vld [vmem:[%s2668_s0 + $0x72] sm:$0x20]   ;;  %198 = vrot.lane.b32.xlu0 %v197_v8, %s1456_s27  ;;  %v1173_v20 = vld [vmem:[%s2668_s0 + $0x6b] sm:$0x10]   ;;  %v1191_v34 = vld [vmem:[%s2668_s0 + $0x3b] sm:$0x10]  }
   0x7   :  { %v126_v13 = vsel %vm60_vm2, %v1181_v10, %v122_v9  ;;  %v1184_v14 = vld [vmem:[%s2668_s0 + $0x91] sm:$0x40]   ;;  %v1174_v23 = vld [vmem:[%s2668_s0 + $0x8a] sm:$0x20]   ;;  %v1192_v35 = vld [vmem:[%s2668_s0 + $0x5a] sm:$0x20]  }
   0x8   :  { %v1185_v15 = vld [vmem:[%s2668_s0 + $0xb0] sm:$0x80]   ;;  %v130_v17 = vsel %vm64_vm3, %v1182_v11, %v126_v13  ;;  %v1175_v24 = vld [vmem:[%s2668_s0 + $0xa9] sm:$0x40]   ;;  %v1193_v38 = vld [vmem:[%s2668_s0 + $0x79] sm:$0x40]  }
   0x9   :  { %v1170_v18 = vld [vmem:[%s2668_s0 + $0x107] ss:$-248 sm:%s83_s15]   ;;  %v134_v21 = vsel %vm68_vm4, %v1183_v12, %v130_v17  ;;  %v1204_v56 = vld [vmem:[%s2668_s0 + $0x25] sm:$0x2]   ;;  %v1212_v6 = vld [vmem:[%s2668_s0 + $0x2c] sm:$0x4]  }
   0xa   :  { %v88_v22 = vsel %vm56_vm1, %v1171_v16, %v1170_v18  ;;  %v1176_v25 = vld [vmem:[%s2668_s0 + $0xc8] sm:$0x80]   ;;  %v138_v26 = vsel %vm72_vm5, %v1184_v14, %v134_v21  ;;  %v1188_v28 = vld [vmem:[%s2668_s0 + $0x117] sm:$0x1]   ;;  %v1194_v39 = vld [vmem:[%s2668_s0 + $0x98] sm:$0x80]   ;;  %v210_v59 = vsel %vm52_vm0, %v1204_v56, %v1203_v55 }
   0xb   :  { %v92_v27 = vsel %vm60_vm2, %v1172_v19, %v88_v22  ;;  %v1189_v29 = vld [vmem:[%s2668_s0 + $0xd6] sm:$0x2]   ;;  %v142_v31 = vsel %vm76_vm6, %v1185_v15, %v138_v26  ;;  %v1162_v40 = vld [vmem:[%s2668_s0 + $0x7] sm:$0x1]   ;;  %v1205_v60 = vld [vmem:[%s2668_s0 + $0x44] sm:$0x4]  }
   0xc   :  { %v1190_v30 = vld [vmem:[%s2668_s0 + $0x2a7] ss:$-216 sm:%s157_s20]   ;;  %v96_v32 = vsel %vm64_vm3, %v1173_v20, %v92_v27  ;;  %v155_v33 = vsel %vm52_vm0, %v1189_v29, %v1188_v28  ;;  %143 = vrot.lane.b32.xlu1 %v142_v31, %s1456_s27  ;;  %v1206_v61 = vld [vmem:[%s2668_s0 + $0x63] sm:$0x8]   ;;  %v214_v0 = vsel %vm56_vm1, %v1205_v60, %v210_v59  ;;  %s276_s12 = smov 6  ;;  %s314_s29 = smov 12 }
   0xd   :  { %v100_v36 = vsel %vm68_vm4, %v1174_v23, %v96_v32  ;;  %v160_v37 = vsel %vm159_vm8, %v1190_v30, %v155_v33  ;;  %v1163_v43 = vld [vmem:[%s2668_s0 + $0x26] sm:$0x2]   ;;  %v1207_v62 = vld [vmem:[%s2668_s0 + $0x82] sm:$0x10]   ;;  %v218_v5 = vsel %vm60_vm2, %v1206_v61, %v214_v0  ;;  %v1213_v7 = vld [vmem:[%s2668_s0 + $0x4b] sm:$0x8]  }
   0xe   :  { %v104_v41 = vsel %vm72_vm5, %v1175_v24, %v100_v36  ;;  %v164_v42 = vsel %vm64_vm3, %v1191_v34, %v160_v37  ;;  %v1164_v44 = vld [vmem:[%s2668_s0 + $0x45] sm:$0x4]   ;;  %v53_v48 = vsel %vm52_vm0, %v1163_v43, %v1162_v40  ;;  %v1208_v1 = vld [vmem:[%s2668_s0 + $0xa1] sm:$0x20]   ;;  %v222_v9 = vsel %vm64_vm3, %v1207_v62, %v218_v5  ;;  %v1214_v11 = vld [vmem:[%s2668_s0 + $0x6a] sm:$0x10]  }
   0xf   :  { %v1165_v45 = vld [vmem:[%s2668_s0 + $0x64] sm:$0x8]   ;;  %v108_v46 = vsel %vm76_vm6, %v1176_v25, %v104_v41  ;;  %v168_v47 = vsel %vm68_vm4, %v1192_v35, %v164_v42  ;;  %v57_v53 = vsel %vm56_vm1, %v1164_v44, %v53_v48  ;;  %v1209_v2 = vld [vmem:[%s2668_s0 + $0xc0] sm:$0x40]   ;;  %v1215_v12 = vld [vmem:[%s2668_s0 + $0x89] sm:$0x20]   ;;  %v226_v14 = vsel %vm68_vm4, %v1208_v1, %v222_v9 }
  0x10   :  { %v1166_v49 = vld [vmem:[%s2668_s0 + $0x83] sm:$0x10]   ;;  %109 = vrot.lane.b32.xlu0 %v108_v46, %s1456_s27  ;;  %v172_v52 = vsel %vm72_vm5, %v1193_v38, %v168_v47  ;;  %v61_v58 = vsel %vm60_vm2, %v1165_v45, %v57_v53  ;;  %v1210_v3 = vld [vmem:[%s2668_s0 + $0xdf] sm:$0x80]   ;;  %v1216_v16 = vld [vmem:[%s2668_s0 + $0xa8] sm:$0x40]   ;;  %v230_v19 = vsel %vm72_vm5, %v1209_v2, %v226_v14 }
  0x11   :  { %v1167_v50 = vld [vmem:[%s2668_s0 + $0xa2] sm:$0x20]   ;;  %v176_v57 = vsel %vm76_vm6, %v1194_v39, %v172_v52  ;;  %v65_v63 = vsel %vm64_vm3, %v1166_v49, %v61_v58  ;;  %v1211_v10 = vld [vmem:[%s2668_s0 + $0x106] ss:$-248 sm:%s240_s7]   ;;  %v234_v23 = vsel %vm76_vm6, %v1210_v3, %v230_v19  ;;  %s1457_s7 = smov 96   ;;  %s397_s21 = smov 3 }
  0x12   :  { %v1168_v51 = vld [vmem:[%s2668_s0 + $0xc1] sm:$0x40]   ;;  %177 = vrot.lane.b32.xlu1 %v176_v57, %s1456_s27  ;;  %v69_v4 = vsel %vm68_vm4, %v1167_v50, %v65_v63  ;;  %v245_v15 = vsel %vm56_vm1, %v1212_v6, %v1211_v10  ;;  %v1217_v17 = vld [vmem:[%s2668_s0 + $0xc7] sm:$0x80]   ;;  %v1222_v22 = vld [vmem:[%s2668_s0 + $0x33] sm:$0x8]  }
  0x13   :  { %v1169_v54 = vld [vmem:[%s2668_s0 + $0xe0] sm:$0x80]   ;;  %v73_v8 = vsel %vm72_vm5, %v1168_v51, %v69_v4  ;;  %v1220_v18 = vld [vmem:[%s2668_s0 + $0x10e] sm:$0x1]   ;;  %v249_v20 = vsel %vm60_vm2, %v1213_v7, %v245_v15  ;;  %v1223_v26 = vld [vmem:[%s2668_s0 + $0x52] sm:$0x10]  }
  0x14   :  { %v77_v13 = vsel %vm76_vm6, %v1169_v54, %v73_v8  ;;  %v1221_v21 = vld [vmem:[%s2668_s0 + $0x1c6] ss:$-216 sm:%s276_s12]   ;;  %v253_v24 = vsel %vm64_vm3, %v1214_v11, %v249_v20  ;;  %v1244_v54 = vld [vmem:[%s2668_s0 + $0x5] sm:$0x1]   ;;  %v1253_v6 = vld [vmem:[%s2668_s0 + $0x2b] sm:$0x4]  }
  0x15   :  { %78 = vrot.lane.b32.xlu0 %v77_v13, %s1456_s27  ;;  %v279_v25 = vsel %vm121_vm7, %v1221_v21, %v1220_v18  ;;  %v1224_v27 = vld [vmem:[%s2668_s0 + $0x71] sm:$0x20]   ;;  %v257_v29 = vsel %vm68_vm4, %v1215_v12, %v253_v24  ;;  %v1232_v38 = vld [vmem:[%s2668_s0 + $0x3a] sm:$0x10]   ;;  %v1245_v55 = vld [vmem:[%s2668_s0 + $0x24] sm:$0x2]  }
  0x16   :  { %v1225_v28 = vld [vmem:[%s2668_s0 + $0x90] sm:$0x40]   ;;  %235 = vrot.lane.b32.xlu1 %v234_v23, %s1457_s7  ;;  %v283_v30 = vsel %vm60_vm2, %v1222_v22, %v279_v25  ;;  %v261_v34 = vsel %vm72_vm5, %v1216_v16, %v257_v29  ;;  %v1233_v39 = vld [vmem:[%s2668_s0 + $0x59] sm:$0x20]   ;;  %v1246_v56 = vld [vmem:[%s2668_s0 + $0x43] sm:$0x4]   ;;  %v367_v59 = vsel %vm52_vm0, %v1245_v55, %v1244_v54 }
  0x17   :  { %v1226_v31 = vld [vmem:[%s2668_s0 + $0xaf] sm:$0x80]   ;;  %v287_v35 = vsel %vm64_vm3, %v1223_v26, %v283_v30  ;;  %v265_v40 = vsel %vm76_vm6, %v1217_v17, %v261_v34  ;;  %v1234_v43 = vld [vmem:[%s2668_s0 + $0x78] sm:$0x40]   ;;  %v1247_v60 = vld [vmem:[%s2668_s0 + $0x62] sm:$0x8]   ;;  %v371_v1 = vsel %vm56_vm1, %v1246_v56, %v367_v59 }
  0x18   :  { %v1229_v32 = vld [vmem:[%s2668_s0 + $0x116] sm:$0x1]   ;;  %v291_v41 = vsel %vm68_vm4, %v1224_v27, %v287_v35  ;;  %v1235_v44 = vld [vmem:[%s2668_s0 + $0x97] sm:$0x80]   ;;  %v1248_v61 = vld [vmem:[%s2668_s0 + $0x81] sm:$0x10]   ;;  %v375_v4 = vsel %vm60_vm2, %v1247_v60, %v371_v1 }
  0x19   :  { %v1230_v33 = vld [vmem:[%s2668_s0 + $0xd5] sm:$0x2]   ;;  %v1238_v45 = vld [vmem:[%s2668_s0 + $0x11e] sm:$0x1]   ;;  %266 = vrot.lane.b32.xlu0 %v265_v40, %s1457_s7  ;;  %v295_v46 = vsel %vm72_vm5, %v1225_v28, %v291_v41  ;;  %v1249_v62 = vld [vmem:[%s2668_s0 + $0xa0] sm:$0x20]   ;;  %v379_v7 = vsel %vm64_vm3, %v1248_v61, %v375_v4 }
  0x1a   :  { %v312_v36 = vsel %vm52_vm0, %v1230_v33, %v1229_v32  ;;  %v1231_v37 = vld [vmem:[%s2668_s0 + $0x2a6] ss:$-216 sm:%s314_s29]   ;;  %v299_v51 = vsel %vm76_vm6, %v1226_v31, %v295_v46  ;;  %v1250_v2 = vld [vmem:[%s2668_s0 + $0xbf] sm:$0x40]   ;;  %s433_s27 = smov 6  ;;  %s1769_s25 = smov 12  ;;  %v383_v12 = vsel %vm68_vm4, %v1249_v62, %v379_v7 }
  0x1b   :  { %v317_v42 = vsel %vm159_vm8, %v1231_v37, %v312_v36  ;;  %v1239_v48 = vld [vmem:[%s2668_s0 + $0xbd] sm:$0x2]   ;;  %300 = vrot.lane.b32.xlu1 %v299_v51, %s1457_s7  ;;  %v1251_v3 = vld [vmem:[%s2668_s0 + $0xde] sm:$0x80]   ;;  %v1254_v9 = vld [vmem:[%s2668_s0 + $0x4a] sm:$0x8]   ;;  %v387_v17 = vsel %vm72_vm5, %v1250_v2, %v383_v12 }
  0x1c   :  { %v321_v47 = vsel %vm64_vm3, %v1232_v38, %v317_v42  ;;  %v1240_v49 = vld [vmem:[%s2668_s0 + $0xdc] sm:$0x4]   ;;  %v346_v53 = vsel %vm52_vm0, %v1239_v48, %v1238_v45  ;;  %v1252_v5 = vld [vmem:[%s2668_s0 + $0x105] ss:$-248 sm:%s397_s21]   ;;  %v391_v22 = vsel %vm76_vm6, %v1251_v3, %v387_v17  ;;  %s1458_s23 = smov 80   ;;  %s590_s11 = smov 6 }
  0x1d   :  { %v1241_v50 = vld [vmem:[%s2668_s0 + $0xfb] sm:$0x8]   ;;  %v325_v52 = vsel %vm68_vm4, %v1233_v39, %v321_v47  ;;  %v350_v58 = vsel %vm56_vm1, %v1240_v49, %v346_v53  ;;  %v402_v8 = vsel %vm56_vm1, %v1253_v6, %v1252_v5  ;;  %v1255_v10 = vld [vmem:[%s2668_s0 + $0x69] sm:$0x10]   ;;  %v1263_v20 = vld [vmem:[%s2668_s0 + $0x32] sm:$0x8]  }
  0x1e   :  { %v329_v57 = vsel %vm72_vm5, %v1234_v43, %v325_v52  ;;  %v354_v0 = vsel %vm60_vm2, %v1241_v50, %v350_v58  ;;  %v1256_v11 = vld [vmem:[%s2668_s0 + $0x88] sm:$0x20]   ;;  %v406_v13 = vsel %vm60_vm2, %v1254_v9, %v402_v8  ;;  %v1264_v21 = vld [vmem:[%s2668_s0 + $0x51] sm:$0x10]   ;;  %v1273_v32 = vld [vmem:[%s2668_s0 + $0x39] sm:$0x10]  }
  0x1f   :  { %v333_v63 = vsel %vm76_vm6, %v1235_v44, %v329_v57  ;;  %355 = vrot.lane.b32.xlu1 %v354_v0, %s1457_s7  ;;  %v1257_v14 = vld [vmem:[%s2668_s0 + $0xa7] sm:$0x40]   ;;  %v410_v18 = vsel %vm64_vm3, %v1255_v10, %v406_v13  ;;  %v1265_v25 = vld [vmem:[%s2668_s0 + $0x70] sm:$0x20]   ;;  %v1274_v37 = vld [vmem:[%s2668_s0 + $0x58] sm:$0x20]  }
  0x20   :  { %334 = vrot.lane.b32.xlu0 %v333_v63, %s1457_s7  ;;  %v1258_v15 = vld [vmem:[%s2668_s0 + $0xc6] sm:$0x80]   ;;  %v414_v23 = vsel %vm68_vm4, %v1256_v11, %v410_v18  ;;  %v1266_v26 = vld [vmem:[%s2668_s0 + $0x8f] sm:$0x40]   ;;  %v1275_v38 = vld [vmem:[%s2668_s0 + $0x77] sm:$0x40]  }
  0x21   :  { %v1261_v16 = vld [vmem:[%s2668_s0 + $0x10d] sm:$0x1]   ;;  %v1267_v27 = vld [vmem:[%s2668_s0 + $0xae] sm:$0x80]   ;;  %v418_v28 = vsel %vm72_vm5, %v1257_v14, %v414_v23  ;;  %v1276_v41 = vld [vmem:[%s2668_s0 + $0x96] sm:$0x80]  }
  0x22   :  { %v1262_v19 = vld [vmem:[%s2668_s0 + $0x1c5] ss:$-216 sm:%s433_s27]   ;;  %v422_v33 = vsel %vm76_vm6, %v1258_v15, %v418_v28  ;;  %v1285_v49 = vld [vmem:[%s2668_s0 + $0x4] sm:$0x1]   ;;  %s554_s7 = smov 3  ;;  %s628_s12 = smov 12 }
  0x23   :  { %v436_v24 = vsel %vm121_vm7, %v1262_v19, %v1261_v16  ;;  %v1270_v30 = vld [vmem:[%s2668_s0 + $0x115] sm:$0x1]   ;;  %423 = vrot.lane.b32.xlu1 %v422_v33, %s1458_s23  ;;  %v1279_v42 = vld [vmem:[%s2668_s0 + $0x11d] sm:$0x1]   ;;  %v1286_v53 = vld [vmem:[%s2668_s0 + $0x23] sm:$0x2]  }
  0x24   :  { %392 = vrot.lane.b32.xlu0 %v391_v22, %s1458_s23  ;;  %v440_v29 = vsel %vm60_vm2, %v1263_v20, %v436_v24  ;;  %v1271_v31 = vld [vmem:[%s2668_s0 + $0xd4] sm:$0x2]   ;;  %v1280_v43 = vld [vmem:[%s2668_s0 + $0xbc] sm:$0x2]   ;;  %v1287_v54 = vld [vmem:[%s2668_s0 + $0x42] sm:$0x4]   ;;  %v524_v57 = vsel %vm52_vm0, %v1286_v53, %v1285_v49 }
  0x25   :  { %v444_v34 = vsel %vm64_vm3, %v1264_v21, %v440_v29  ;;  %v469_v35 = vsel %vm52_vm0, %v1271_v31, %v1270_v30  ;;  %v1272_v36 = vld [vmem:[%s2668_s0 + $0x2a5] ss:$-216 sm:%s1769_s25]   ;;  %v503_v46 = vsel %vm52_vm0, %v1280_v43, %v1279_v42  ;;  %v1288_v55 = vld [vmem:[%s2668_s0 + $0x61] sm:$0x8]   ;;  %v528_v63 = vsel %vm56_vm1, %v1287_v54, %v524_v57  ;;  %v1294_v1 = vld [vmem:[%s2668_s0 + $0x2a] sm:$0x4]  }
  0x26   :  { %v448_v39 = vsel %vm68_vm4, %v1265_v25, %v444_v34  ;;  %v474_v40 = vsel %vm159_vm8, %v1272_v36, %v469_v35  ;;  %v1281_v47 = vld [vmem:[%s2668_s0 + $0xdb] sm:$0x4]   ;;  %v1289_v58 = vld [vmem:[%s2668_s0 + $0x80] sm:$0x10]   ;;  %v532_v2 = vsel %vm60_vm2, %v1288_v55, %v528_v63  ;;  %v1295_v4 = vld [vmem:[%s2668_s0 + $0x49] sm:$0x8]  }
  0x27   :  { %v452_v44 = vsel %vm72_vm5, %v1266_v26, %v448_v39  ;;  %v478_v45 = vsel %vm64_vm3, %v1273_v32, %v474_v40  ;;  %v1282_v48 = vld [vmem:[%s2668_s0 + $0xfa] sm:$0x8]   ;;  %v507_v52 = vsel %vm56_vm1, %v1281_v47, %v503_v46  ;;  %v1290_v59 = vld [vmem:[%s2668_s0 + $0x9f] sm:$0x20]   ;;  %v536_v5 = vsel %vm64_vm3, %v1289_v58, %v532_v2  ;;  %v1296_v7 = vld [vmem:[%s2668_s0 + $0x68] sm:$0x10]  }
  0x28   :  { %v456_v50 = vsel %vm76_vm6, %v1267_v27, %v452_v44  ;;  %v482_v51 = vsel %vm68_vm4, %v1274_v37, %v478_v45  ;;  %v1291_v60 = vld [vmem:[%s2668_s0 + $0xbe] sm:$0x40]   ;;  %v511_v62 = vsel %vm60_vm2, %v1282_v48, %v507_v52  ;;  %v1297_v8 = vld [vmem:[%s2668_s0 + $0x87] sm:$0x20]   ;;  %v540_v10 = vsel %vm68_vm4, %v1290_v59, %v536_v5  ;;  %v1304_v14 = vld [vmem:[%s2668_s0 + $0x31] sm:$0x8]  }
  0x29   :  { %457 = vrot.lane.b32.xlu0 %v456_v50, %s1458_s23  ;;  %v486_v56 = vsel %vm72_vm5, %v1275_v38, %v482_v51  ;;  %v1292_v0 = vld [vmem:[%s2668_s0 + $0xdd] sm:$0x80]   ;;  %v1298_v9 = vld [vmem:[%s2668_s0 + $0xa6] sm:$0x40]   ;;  %v544_v15 = vsel %vm72_vm5, %v1291_v60, %v540_v10  ;;  %v1305_v18 = vld [vmem:[%s2668_s0 + $0x50] sm:$0x10]  }
  0x2a   :  { %v490_v61 = vsel %vm76_vm6, %v1276_v41, %v486_v56  ;;  %v1293_v3 = vld [vmem:[%s2668_s0 + $0x104] ss:$-248 sm:%s554_s7]   ;;  %v548_v20 = vsel %vm76_vm6, %v1292_v0, %v544_v15  ;;  %s1459_s8 = smov 64   ;;  %s1964_s14 = smov 6  ;;  %v1326_v46 = vld [vmem:[%s2668_s0 + $0x3] sm:$0x1]  }
  0x2b   :  { %491 = vrot.lane.b32.xlu1 %v490_v61, %s1458_s23  ;;  %v559_v6 = vsel %vm56_vm1, %v1294_v1, %v1293_v3  ;;  %v1299_v12 = vld [vmem:[%s2668_s0 + $0xc5] sm:$0x80]   ;;  %v1306_v19 = vld [vmem:[%s2668_s0 + $0x6f] sm:$0x20]   ;;  %v1314_v33 = vld [vmem:[%s2668_s0 + $0x38] sm:$0x10]  }
  0x2c   :  { %v563_v11 = vsel %vm60_vm2, %v1295_v4, %v559_v6  ;;  %v1302_v13 = vld [vmem:[%s2668_s0 + $0x10c] sm:$0x1]   ;;  %v1307_v23 = vld [vmem:[%s2668_s0 + $0x8e] sm:$0x40]   ;;  %v1315_v34 = vld [vmem:[%s2668_s0 + $0x57] sm:$0x20]  }
  0x2d   :  { %512 = vrot.lane.b32.xlu0 %v511_v62, %s1458_s23  ;;  %v567_v16 = vsel %vm64_vm3, %v1296_v7, %v563_v11  ;;  %v1303_v17 = vld [vmem:[%s2668_s0 + $0x1c4] ss:$-216 sm:%s590_s11]   ;;  %v1327_v50 = vld [vmem:[%s2668_s0 + $0x22] sm:$0x2]   ;;  %s785_s10 = smov 12  ;;  %s1460_s24 = smov 48  }
  0x2e   :  { %v571_v21 = vsel %vm68_vm4, %v1297_v8, %v567_v16  ;;  %v593_v22 = vsel %vm121_vm7, %v1303_v17, %v1302_v13  ;;  %v1308_v24 = vld [vmem:[%s2668_s0 + $0xad] sm:$0x80]   ;;  %v1316_v35 = vld [vmem:[%s2668_s0 + $0x76] sm:$0x40]   ;;  %v1328_v51 = vld [vmem:[%s2668_s0 + $0x41] sm:$0x4]   ;;  %v681_v54 = vsel %vm52_vm0, %v1327_v50, %v1326_v46 }
  0x2f   :  { %v1311_v25 = vld [vmem:[%s2668_s0 + $0x114] sm:$0x1]   ;;  %549 = vrot.lane.b32.xlu1 %v548_v20, %s1459_s8  ;;  %v575_v26 = vsel %vm72_vm5, %v1298_v9, %v571_v21  ;;  %v597_v27 = vsel %vm60_vm2, %v1304_v14, %v593_v22  ;;  %v1317_v38 = vld [vmem:[%s2668_s0 + $0x95] sm:$0x80]   ;;  %v1329_v52 = vld [vmem:[%s2668_s0 + $0x60] sm:$0x8]   ;;  %v685_v60 = vsel %vm56_vm1, %v1328_v51, %v681_v54 }
  0x30   :  { %v1312_v28 = vld [vmem:[%s2668_s0 + $0xd3] sm:$0x2]   ;;  %v579_v30 = vsel %vm76_vm6, %v1299_v12, %v575_v26  ;;  %v601_v31 = vsel %vm64_vm3, %v1305_v18, %v597_v27  ;;  %v1320_v39 = vld [vmem:[%s2668_s0 + $0x11c] sm:$0x1]   ;;  %v1330_v55 = vld [vmem:[%s2668_s0 + $0x7f] sm:$0x10]   ;;  %v689_v0 = vsel %vm60_vm2, %v1329_v52, %v685_v60 }
  0x31   :  { %v1313_v29 = vld [vmem:[%s2668_s0 + $0x2a4] ss:$-216 sm:%s628_s12]   ;;  %s1962_s12 = smov 3  ;;  %v626_v32 = vsel %vm52_vm0, %v1312_v28, %v1311_v25  ;;  %580 = vrot.lane.b32.xlu0 %v579_v30, %s1459_s8  ;;  %v605_v36 = vsel %vm68_vm4, %v1306_v19, %v601_v31  ;;  %v1331_v56 = vld [vmem:[%s2668_s0 + $0x9e] sm:$0x20]   ;;  %v693_v5 = vsel %vm64_vm3, %v1330_v55, %v689_v0  ;;  %s2106_s30 = smov 3 }
  0x32   :  { %v631_v37 = vsel %vm159_vm8, %v1313_v29, %v626_v32  ;;  %v1321_v40 = vld [vmem:[%s2668_s0 + $0xbb] sm:$0x2]   ;;  %v609_v41 = vsel %vm72_vm5, %v1307_v23, %v605_v36  ;;  %v1332_v57 = vld [vmem:[%s2668_s0 + $0xbd] sm:$0x40]   ;;  %v1335_v63 = vld [vmem:[%s2668_s0 + $0x29] sm:$0x4]   ;;  %v697_v10 = vsel %vm68_vm4, %v1331_v56, %v693_v5 }
  0x33   :  { %v635_v42 = vsel %vm64_vm3, %v1314_v33, %v631_v37  ;;  %v660_v43 = vsel %vm52_vm0, %v1321_v40, %v1320_v39  ;;  %v1322_v44 = vld [vmem:[%s2668_s0 + $0xda] sm:$0x4]   ;;  %v613_v47 = vsel %vm76_vm6, %v1308_v24, %v609_v41  ;;  %v1333_v61 = vld [vmem:[%s2668_s0 + $0xdc] sm:$0x80]   ;;  %v1336_v2 = vld [vmem:[%s2668_s0 + $0x48] sm:$0x8]   ;;  %v701_v14 = vsel %vm72_vm5, %v1332_v57, %v697_v10 }
  0x34   :  { %v1323_v45 = vld [vmem:[%s2668_s0 + $0xf9] sm:$0x8]   ;;  %v639_v48 = vsel %vm68_vm4, %v1315_v34, %v635_v42  ;;  %v664_v49 = vsel %vm56_vm1, %v1322_v44, %v660_v43  ;;  %614 = vrot.lane.b32.xlu1 %v613_v47, %s1459_s8  ;;  %v1334_v62 = vld [vmem:[%s2668_s0 + $0x103] ss:$-248 sm:%s1962_s12]   ;;  %v705_v20 = vsel %vm76_vm6, %v1333_v61, %v701_v14  ;;  %s2177_s6 = smov 12  ;;  %s1461_s4 = smov 32  }
  0x35   :  { %v643_v53 = vsel %vm72_vm5, %v1316_v35, %v639_v48  ;;  %v668_v59 = vsel %vm60_vm2, %v1323_v45, %v664_v49  ;;  %v716_v1 = vsel %vm56_vm1, %v1335_v63, %v1334_v62  ;;  %v1337_v3 = vld [vmem:[%s2668_s0 + $0x67] sm:$0x10]   ;;  %v1345_v13 = vld [vmem:[%s2668_s0 + $0x30] sm:$0x8]   ;;  %v1355_v30 = vld [vmem:[%s2668_s0 + $0x37] sm:$0x10]  }
  0x36   :  { %v647_v58 = vsel %vm76_vm6, %v1317_v38, %v643_v53  ;;  %v1338_v4 = vld [vmem:[%s2668_s0 + $0x86] sm:$0x20]   ;;  %v720_v6 = vsel %vm60_vm2, %v1336_v2, %v716_v1  ;;  %v1346_v17 = vld [vmem:[%s2668_s0 + $0x4f] sm:$0x10]   ;;  %v1356_v33 = vld [vmem:[%s2668_s0 + $0x56] sm:$0x20]  }
  0x37   :  { %648 = vrot.lane.b32.xlu0 %v647_v58, %s1459_s8  ;;  %v1339_v7 = vld [vmem:[%s2668_s0 + $0xa5] sm:$0x40]   ;;  %v724_v11 = vsel %vm64_vm3, %v1337_v3, %v720_v6  ;;  %v1347_v18 = vld [vmem:[%s2668_s0 + $0x6e] sm:$0x20]   ;;  %v1357_v34 = vld [vmem:[%s2668_s0 + $0x75] sm:$0x40]  }
  0x38   :  { %v1340_v8 = vld [vmem:[%s2668_s0 + $0xc4] sm:$0x80]   ;;  %669 = vrot.lane.b32.xlu1 %v668_v59, %s1459_s8  ;;  %v728_v15 = vsel %vm68_vm4, %v1338_v4, %v724_v11  ;;  %v1348_v19 = vld [vmem:[%s2668_s0 + $0x8d] sm:$0x40]   ;;  %v1358_v35 = vld [vmem:[%s2668_s0 + $0x94] sm:$0x80]  }
  0x39   :  { %v1343_v9 = vld [vmem:[%s2668_s0 + $0x10b] sm:$0x1]   ;;  %v732_v21 = vsel %vm72_vm5, %v1339_v7, %v728_v15  ;;  %v1349_v23 = vld [vmem:[%s2668_s0 + $0xac] sm:$0x80]   ;;  %v1361_v38 = vld [vmem:[%s2668_s0 + $0x11b] sm:$0x1]  }
  0x3a   :  { %v1344_v12 = vld [vmem:[%s2668_s0 + $0x1c3] ss:$-216 sm:%s1964_s14]   ;;  %v736_v26 = vsel %vm76_vm6, %v1340_v8, %v732_v21  ;;  %v1367_v45 = vld [vmem:[%s2668_s0 + $0x2] sm:$0x1]   ;;  %v1376_v61 = vld [vmem:[%s2668_s0 + $0x28] sm:$0x4]  }
  0x3b   :  { %v750_v16 = vsel %vm121_vm7, %v1344_v12, %v1343_v9  ;;  %v1352_v24 = vld [vmem:[%s2668_s0 + $0x113] sm:$0x1]   ;;  %706 = vrot.lane.b32.xlu0 %v705_v20, %s1460_s24  ;;  %v1362_v39 = vld [vmem:[%s2668_s0 + $0xba] sm:$0x2]   ;;  %v1368_v46 = vld [vmem:[%s2668_s0 + $0x21] sm:$0x2]  }
  0x3c   :  { %v754_v22 = vsel %vm60_vm2, %v1345_v13, %v750_v16  ;;  %v1353_v25 = vld [vmem:[%s2668_s0 + $0xd2] sm:$0x2]   ;;  %737 = vrot.lane.b32.xlu1 %v736_v26, %s1460_s24  ;;  %v1363_v40 = vld [vmem:[%s2668_s0 + $0xd9] sm:$0x4]   ;;  %v817_v43 = vsel %vm52_vm0, %v1362_v39, %v1361_v38  ;;  %v838_v49 = vsel %vm52_vm0, %v1368_v46, %v1367_v45  ;;  %v1369_v50 = vld [vmem:[%s2668_s0 + $0x40] sm:$0x4]  }
  0x3d   :  { %v758_v27 = vsel %vm64_vm3, %v1346_v17, %v754_v22  ;;  %v783_v28 = vsel %vm52_vm0, %v1353_v25, %v1352_v24  ;;  %v1354_v29 = vld [vmem:[%s2668_s0 + $0x2a3] ss:$-216 sm:%s785_s10]   ;;  %v821_v48 = vsel %vm56_vm1, %v1363_v40, %v817_v43  ;;  %v1370_v51 = vld [vmem:[%s2668_s0 + $0x5f] sm:$0x8]   ;;  %v842_v55 = vsel %vm56_vm1, %v1369_v50, %v838_v49  ;;  %s904_s8 = smov 6  ;;  %s1061_s22 = smov 6 }
  0x3e   :  { %v762_v31 = vsel %vm68_vm4, %v1347_v18, %v758_v27  ;;  %v788_v32 = vsel %vm159_vm8, %v1354_v29, %v783_v28  ;;  %v1364_v44 = vld [vmem:[%s2668_s0 + $0xf8] sm:$0x8]   ;;  %v1371_v52 = vld [vmem:[%s2668_s0 + $0x7e] sm:$0x10]   ;;  %v846_v59 = vsel %vm60_vm2, %v1370_v51, %v842_v55  ;;  %v1377_v0 = vld [vmem:[%s2668_s0 + $0x47] sm:$0x8]  }
  0x3f   :  { %v766_v36 = vsel %vm72_vm5, %v1348_v19, %v762_v31  ;;  %v792_v37 = vsel %vm64_vm3, %v1355_v30, %v788_v32  ;;  %v825_v54 = vsel %vm60_vm2, %v1364_v44, %v821_v48  ;;  %v1372_v56 = vld [vmem:[%s2668_s0 + $0x9d] sm:$0x20]   ;;  %v850_v62 = vsel %vm64_vm3, %v1371_v52, %v846_v59  ;;  %v1378_v1 = vld [vmem:[%s2668_s0 + $0x66] sm:$0x10]   ;;  %v1386_v11 = vld [vmem:[%s2668_s0 + $0x2f] sm:$0x8]  }
  0x40   :  { %v770_v41 = vsel %vm76_vm6, %v1349_v23, %v766_v36  ;;  %v796_v42 = vsel %vm68_vm4, %v1356_v33, %v792_v37  ;;  %v1373_v57 = vld [vmem:[%s2668_s0 + $0xbc] sm:$0x40]   ;;  %v1379_v2 = vld [vmem:[%s2668_s0 + $0x85] sm:$0x20]   ;;  %v854_v3 = vsel %vm68_vm4, %v1372_v56, %v850_v62  ;;  %v1387_v12 = vld [vmem:[%s2668_s0 + $0x4e] sm:$0x10]  }
  0x41   :  { %771 = vrot.lane.b32.xlu0 %v770_v41, %s1460_s24  ;;  %v800_v47 = vsel %vm72_vm5, %v1357_v34, %v796_v42  ;;  %v1374_v58 = vld [vmem:[%s2668_s0 + $0xdb] sm:$0x80]   ;;  %v1380_v5 = vld [vmem:[%s2668_s0 + $0xa4] sm:$0x40]   ;;  %v858_v8 = vsel %vm72_vm5, %v1373_v57, %v854_v3  ;;  %v1388_v16 = vld [vmem:[%s2668_s0 + $0x6d] sm:$0x20]  }
  0x42   :  { %v804_v53 = vsel %vm76_vm6, %v1358_v35, %v800_v47  ;;  %v1375_v60 = vld [vmem:[%s2668_s0 + $0x102] ss:$-248 sm:%s2106_s30]   ;;  %v862_v13 = vsel %vm76_vm6, %v1374_v58, %v858_v8  ;;  %v1408_v40 = vld [vmem:[%s2668_s0 + $0x1] sm:$0x1]   ;;  %v1417_v56 = vld [vmem:[%s2668_s0 + $0x27] sm:$0x4]  }
  0x43   :  { %805 = vrot.lane.b32.xlu1 %v804_v53, %s1460_s24  ;;  %v873_v63 = vsel %vm56_vm1, %v1376_v61, %v1375_v60  ;;  %v1381_v6 = vld [vmem:[%s2668_s0 + $0xc3] sm:$0x80]   ;;  %v1389_v17 = vld [vmem:[%s2668_s0 + $0x8c] sm:$0x40]   ;;  %v1396_v23 = vld [vmem:[%s2668_s0 + $0x36] sm:$0x10]  }
  0x44   :  { %v877_v4 = vsel %vm60_vm2, %v1377_v0, %v873_v63  ;;  %v1384_v7 = vld [vmem:[%s2668_s0 + $0x10a] sm:$0x1]   ;;  %v1390_v18 = vld [vmem:[%s2668_s0 + $0xab] sm:$0x80]   ;;  %v1397_v28 = vld [vmem:[%s2668_s0 + $0x55] sm:$0x20]  }
  0x45   :  { %826 = vrot.lane.b32.xlu0 %v825_v54, %s1460_s24  ;;  %v881_v9 = vsel %vm64_vm3, %v1378_v1, %v877_v4  ;;  %v1385_v10 = vld [vmem:[%s2668_s0 + $0x1c2] ss:$-216 sm:%s904_s8]   ;;  %v1409_v44 = vld [vmem:[%s2668_s0 + $0x20] sm:$0x2]   ;;  %s1025_s24 = smov 3  ;;  %s1099_s12 = smov 12 }
  0x46   :  { %v885_v14 = vsel %vm68_vm4, %v1379_v2, %v881_v9  ;;  %v907_v15 = vsel %vm121_vm7, %v1385_v10, %v1384_v7  ;;  %v1393_v21 = vld [vmem:[%s2668_s0 + $0x112] sm:$0x1]   ;;  %v1398_v29 = vld [vmem:[%s2668_s0 + $0x74] sm:$0x40]   ;;  %v1410_v45 = vld [vmem:[%s2668_s0 + $0x3f] sm:$0x4]   ;;  %v995_v48 = vsel %vm52_vm0, %v1409_v44, %v1408_v40 }
  0x47   :  { %863 = vrot.lane.b32.xlu1 %v862_v13, %s1461_s4  ;;  %v889_v19 = vsel %vm72_vm5, %v1380_v5, %v885_v14  ;;  %v911_v20 = vsel %vm60_vm2, %v1386_v11, %v907_v15  ;;  %v1394_v22 = vld [vmem:[%s2668_s0 + $0xd1] sm:$0x2]   ;;  %v1399_v32 = vld [vmem:[%s2668_s0 + $0x93] sm:$0x80]   ;;  %v1411_v46 = vld [vmem:[%s2668_s0 + $0x5e] sm:$0x8]   ;;  %v999_v54 = vsel %vm56_vm1, %v1410_v45, %v995_v48 }
  0x48   :  { %v893_v24 = vsel %vm76_vm6, %v1381_v6, %v889_v19  ;;  %v915_v25 = vsel %vm64_vm3, %v1387_v12, %v911_v20  ;;  %v940_v26 = vsel %vm52_vm0, %v1394_v22, %v1393_v21  ;;  %v1395_v27 = vld [vmem:[%s2668_s0 + $0x2a2] ss:$-216 sm:%s2177_s6]   ;;  %v1412_v49 = vld [vmem:[%s2668_s0 + $0x7d] sm:$0x10]   ;;  %v1003_v57 = vsel %vm60_vm2, %v1411_v46, %v999_v54  ;;  %v1418_v59 = vld [vmem:[%s2668_s0 + $0x46] sm:$0x8]  }
  0x49   :  { %894 = vrot.lane.b32.xlu0 %v893_v24, %s1461_s4  ;;  %v919_v30 = vsel %vm68_vm4, %v1388_v16, %v915_v25  ;;  %v945_v31 = vsel %vm159_vm8, %v1395_v27, %v940_v26  ;;  %v1402_v33 = vld [vmem:[%s2668_s0 + $0x11a] sm:$0x1]   ;;  %v1413_v50 = vld [vmem:[%s2668_s0 + $0x9c] sm:$0x20]   ;;  %v1007_v60 = vsel %vm64_vm3, %v1412_v49, %v1003_v57  ;;  %v1419_v62 = vld [vmem:[%s2668_s0 + $0x65] sm:$0x10]  }
  0x4a   :  { %v1403_v34 = vld [vmem:[%s2668_s0 + $0xb9] sm:$0x2]   ;;  %v923_v35 = vsel %vm72_vm5, %v1389_v17, %v919_v30  ;;  %v949_v36 = vsel %vm64_vm3, %v1396_v23, %v945_v31  ;;  %v1414_v51 = vld [vmem:[%s2668_s0 + $0xbb] sm:$0x40]   ;;  %v1420_v63 = vld [vmem:[%s2668_s0 + $0x84] sm:$0x20]   ;;  %v1011_v1 = vsel %vm68_vm4, %v1413_v50, %v1007_v60 }
  0x4b   :  { %v974_v37 = vsel %vm52_vm0, %v1403_v34, %v1402_v33  ;;  %v1404_v38 = vld [vmem:[%s2668_s0 + $0xd8] sm:$0x4]   ;;  %v927_v41 = vsel %vm76_vm6, %v1390_v18, %v923_v35  ;;  %v953_v42 = vsel %vm68_vm4, %v1397_v28, %v949_v36  ;;  %v1415_v55 = vld [vmem:[%s2668_s0 + $0xda] sm:$0x80]   ;;  %v1421_v0 = vld [vmem:[%s2668_s0 + $0xa3] sm:$0x40]   ;;  %v1015_v6 = vsel %vm72_vm5, %v1414_v51, %v1011_v1 }
  0x4c   :  { %v1405_v39 = vld [vmem:[%s2668_s0 + $0xf7] sm:$0x8]   ;;  %v978_v43 = vsel %vm56_vm1, %v1404_v38, %v974_v37  ;;  %928 = vrot.lane.b32.xlu1 %v927_v41, %s1461_s4  ;;  %v957_v47 = vsel %vm72_vm5, %v1398_v29, %v953_v42  ;;  %v1416_v58 = vld [vmem:[%s2668_s0 + $0x101] ss:$-248 sm:%s1025_s24]   ;;  %v1019_v11 = vsel %vm76_vm6, %v1415_v55, %v1015_v6  ;;  %s1462_s23 = smov 16   ;;  %vm4_vm9 = vcmask 1047556  }
  0x4d   :  { %v961_v52 = vsel %vm76_vm6, %v1399_v32, %v957_v47  ;;  %v982_v53 = vsel %vm60_vm2, %v1405_v39, %v978_v43  ;;  %v1030_v61 = vsel %vm56_vm1, %v1417_v56, %v1416_v58  ;;  %v1422_v3 = vld [vmem:[%s2668_s0 + $0xc2] sm:$0x80]   ;;  %v1427_v5 = vld [vmem:[%s2668_s0 + $0x2e] sm:$0x8]   ;;  %v1437_v24 = vld [vmem:[%s2668_s0 + $0x35] sm:$0x10]  }
  0x4e   :  { %962 = vrot.lane.b32.xlu0 %v961_v52, %s1461_s4  ;;  %v1034_v2 = vsel %vm60_vm2, %v1418_v59, %v1030_v61  ;;  %v1425_v4 = vld [vmem:[%s2668_s0 + $0x109] sm:$0x1]   ;;  %v1428_v9 = vld [vmem:[%s2668_s0 + $0x4d] sm:$0x10]   ;;  %v1438_v25 = vld [vmem:[%s2668_s0 + $0x54] sm:$0x20]  }
  0x4f   :  { %v1038_v7 = vsel %vm64_vm3, %v1419_v62, %v1034_v2  ;;  %v1426_v8 = vld [vmem:[%s2668_s0 + $0x1c1] ss:$-216 sm:%s1061_s22]   ;;  %vm6_vm10 = vcmask 130048   ;;  %v1148_v40 = vld [vmem:[%s2668_s0 + $0x40] ss:$8 sm:$0xf]  }
  0x50   :  { %983 = vrot.lane.b32.xlu1 %v982_v53, %s1461_s4  ;;  %v1429_v10 = vld [vmem:[%s2668_s0 + $0x6c] sm:$0x20]   ;;  %v1042_v12 = vsel %vm68_vm4, %v1420_v63, %v1038_v7  ;;  %v1064_v13 = vsel %vm121_vm7, %v1426_v8, %v1425_v4  ;;  %v1439_v28 = vld [vmem:[%s2668_s0 + $0x73] sm:$0x40]   ;;  %vm80_vm11 = vcmask 1048448   ;;  %vm237_vm12 = vcmask 917248  }
  0x51   :  { %v1430_v14 = vld [vmem:[%s2668_s0 + $0x8b] sm:$0x40]   ;;  %v1046_v17 = vsel %vm72_vm5, %v1421_v0, %v1042_v12  ;;  %v1068_v18 = vsel %vm60_vm2, %v1427_v5, %v1064_v13  ;;  %v1443_v29 = vld [vmem:[%s2668_s0 + $0x119] sm:$0x1]   ;;  %vm394_vm13 = vcmask 786048   ;;  %vm551_vm14 = vcmask 654848  }
  0x52   :  { %v1431_v15 = vld [vmem:[%s2668_s0 + $0xaa] sm:$0x80]   ;;  %1020 = vrot.lane.b32.xlu0 %v1019_v11, %s1462_s23  ;;  %v1050_v21 = vsel %vm76_vm6, %v1422_v3, %v1046_v17  ;;  %v1072_v22 = vsel %vm64_vm3, %v1428_v9, %v1068_v18  ;;  %v1444_v30 = vld [vmem:[%s2668_s0 + $0xb8] sm:$0x2]   ;;  %vm708_vm15 = vcmask 523648  }
  0x53   :  { %v1434_v16 = vld [vmem:[%s2668_s0 + $0x111] sm:$0x1]   ;;  %v1076_v26 = vsel %vm68_vm4, %v1429_v10, %v1072_v22  ;;  %v1440_v33 = vld [vmem:[%s2668_s0 + $0x92] sm:$0x80]   ;;  %v1131_v34 = vsel %vm52_vm0, %v1444_v30, %v1443_v29 }
  0x54   :  { %v1435_v19 = vld [vmem:[%s2668_s0 + $0xd0] sm:$0x2]   ;;  %1051 = vrot.lane.b32.xlu1 %v1050_v21, %s1462_s23  ;;  %v1080_v31 = vsel %vm72_vm5, %v1430_v14, %v1076_v26  ;;  %v1445_v35 = vld [vmem:[%s2668_s0 + $0xd7] sm:$0x4]  }
  0x55   :  { %v1436_v20 = vld [vmem:[%s2668_s0 + $0x2a1] ss:$-216 sm:%s1099_s12]   ;;  %v1097_v23 = vsel %vm52_vm0, %v1435_v19, %v1434_v16  ;;  %v1084_v37 = vsel %vm76_vm6, %v1431_v15, %v1080_v31  ;;  %v1135_v39 = vsel %vm56_vm1, %v1445_v35, %v1131_v34  ;;  %v1149_v41 = vld [vmem:[%s2668_s0 + $0x40] ss:$8 sm:$0xf0]   ;;  %vm865_vm0 = vcmask 392448  }
  0x56   :  { %v1102_v27 = vsel %vm159_vm8, %v1436_v20, %v1097_v23  ;;  %v1446_v36 = vld [vmem:[%s2668_s0 + $0xf6] sm:$0x8]   ;;  %1085 = vrot.lane.b32.xlu0 %v1084_v37, %s1462_s23  ;;  %v15_v43 = vsel %vm4_vm9, %v1149_v41, %v1148_v40  ;;  %v1152_v44 = vld [vmem:[%s2668_s0 + $0x80] ss:$8 sm:$0xf]   ;;  %vm1022_vm1 = vcmask 261248  }
  0x57   :  { %v1106_v32 = vsel %vm64_vm3, %v1437_v24, %v1102_v27  ;;  %v1153_v45 = vld [vmem:[%s2668_s0 + $0x80] ss:$8 sm:$0xf0]   ;;  %v1139_v47 = vsel %vm60_vm2, %v1446_v36, %v1135_v39  ;;  %1150 = vst.msk [vmem:[%s2669_s1 + $0x2] ss:$8 sm:$0xf] %vm6_vm10, %v15_v43  }
  0x58   :  { %v1110_v38 = vsel %vm68_vm4, %v1438_v25, %v1106_v32  ;;  %1151 = vst.msk [vmem:[%s2669_s1 - $0x1d] ss:$8 sm:$0xf0] %vm6_vm10, %v15_v43   ;;  %v26_v48 = vsel %vm4_vm9, %v1153_v45, %v1152_v44  ;;  %v1156_v49 = vld [vmem:[%s2668_s0 + $0xc0] ss:$8 sm:$0xf]  }
  0x59   :  { %v1114_v42 = vsel %vm72_vm5, %v1439_v28, %v1110_v38  ;;  %v1157_v50 = vld [vmem:[%s2668_s0 + $0xc0] ss:$8 sm:$0xf0]   ;;  %1154 = vst.msk [vmem:[%s2669_s1 + $0x4] ss:$8 sm:$0xf] %vm6_vm10, %v26_v48  }
  0x5a   :  { %v1118_v46 = vsel %vm76_vm6, %v1440_v33, %v1114_v42  ;;  %1155 = vst.msk [vmem:[%s2669_s1 - $0x1b] ss:$8 sm:$0xf0] %vm6_vm10, %v26_v48   ;;  %v37_v51 = vsel %vm4_vm9, %v1157_v50, %v1156_v49  ;;  %v1160_v52 = vld [vmem:[%s2668_s0 + $0x100] ss:$8 sm:$0xf]   ;;  %1140 = vrot.lane.b32.xlu0 %v1139_v47, %s1462_s23 }
  0x5b   :  { %1119 = vrot.lane.b32.xlu1 %v1118_v46, %s1462_s23  ;;  %v2_v53 = vld [vmem:[%s2668_s0] ss:$8 sm:$0xf]   ;;  %1158 = vst.msk [vmem:[%s2669_s1 + $0x6] ss:$8 sm:$0xf] %vm6_vm10, %v37_v51  }
  0x5c   :  { %1159 = vst.msk [vmem:[%s2669_s1 - $0x19] ss:$8 sm:$0xf0] %vm6_vm10, %v37_v51   ;;  %1161 = vst.msk [vmem:[%s2669_s1 + $0x20] ss:$8 sm:$0xf] %vm6_vm10, %v1160_v52  }
  0x5d   :  { %v3_v54 = vld [vmem:[%s2668_s0] ss:$8 sm:$0xf0]  }
  0x5e   :  { %v5_v55 = vsel %vm4_vm9, %v3_v54, %v2_v53 }
  0x5f   :  { %7 = vst.msk [vmem:[%s2669_s1] ss:$8 sm:$0xf] %vm6_vm10, %v5_v55   ;;  %1147 = vst.msk [vmem:[%s2669_s1 - $0x1f] ss:$8 sm:$0xf0] %vm6_vm10, %v5_v55  }
  0x78   :  { %v199_v56 = vpop.permute.xlu0 %198  }
  0x79   :  { %1201 = vst.msk [vmem:[%s2669_s1 + $0x38] ss:$-27 sm:$0x3] %vm80_vm11, %v199_v56   ;;  %1202 = vst.msk [vmem:[%s2669_s1 + $0x1c] sm:$0xc] %vm80_vm11, %v199_v56  }
  0x7e   :  { %v144_v57 = vpop.permute.xlu1 %143  }
  0x7f   :  { %1186 = vst.msk [vmem:[%s2669_s1 + $0x28] ss:$-25 sm:$0x3] %vm80_vm11, %v144_v57   ;;  %1187 = vst.msk [vmem:[%s2669_s1 + $0xe] sm:$0xfc] %vm80_vm11, %v144_v57  }
  0x82   :  { %v110_v58 = vpop.permute.xlu0 %109  }
  0x83   :  { %1177 = vst.msk [vmem:[%s2669_s1 + $0x20] ss:$-24 sm:$0x3] %vm80_vm11, %v110_v58   ;;  %1178 = vst.msk [vmem:[%s2669_s1 + $0x7] sm:$0xfc] %vm80_vm11, %v110_v58  }
  0x84   :  { %v178_v59 = vpop.permute.xlu1 %177  }
  0x85   :  { %1195 = vst.msk [vmem:[%s2669_s1 + $0x30] ss:$-26 sm:$0x3] %vm80_vm11, %v178_v59   ;;  %1196 = vst.msk [vmem:[%s2669_s1 + $0x15] sm:$0xfc] %vm80_vm11, %v178_v59  }
  0x87   :  { %v79_v60 = vpop.permute.xlu0 %78  }
  0x88   :  { %81 = vst.msk [vmem:[%s2669_s1] sm:$0xff] %vm80_vm11, %v79_v60   ;;  %v236_v61 = vpop.permute.xlu1 %235  }
  0x89   :  { %238 = vst.msk [vmem:[%s2669_s1] sm:$0xff] %vm237_vm12, %v236_v61  }
  0x8b   :  { %v267_v62 = vpop.permute.xlu0 %266  }
  0x8c   :  { %1218 = vst.msk [vmem:[%s2669_s1 + $0x20] ss:$-24 sm:$0x3] %vm237_vm12, %v267_v62   ;;  %1219 = vst.msk [vmem:[%s2669_s1 + $0x7] sm:$0xfc] %vm237_vm12, %v267_v62  }
  0x8d   :  { %v301_v63 = vpop.permute.xlu1 %300  }
  0x8e   :  { %1227 = vst.msk [vmem:[%s2669_s1 + $0x28] ss:$-25 sm:$0x3] %vm237_vm12, %v301_v63   ;;  %1228 = vst.msk [vmem:[%s2669_s1 + $0xe] sm:$0xfc] %vm237_vm12, %v301_v63  }
  0x91   :  { %v356_v1 = vpop.permute.xlu1 %355  }
  0x92   :  { %v335_v0 = vpop.permute.xlu0 %334   ;;  %1242 = vst.msk [vmem:[%s2669_s1 + $0x38] ss:$-27 sm:$0x3] %vm237_vm12, %v356_v1   ;;  %1243 = vst.msk [vmem:[%s2669_s1 + $0x1c] sm:$0xc] %vm237_vm12, %v356_v1  }
  0x93   :  { %1236 = vst.msk [vmem:[%s2669_s1 + $0x30] ss:$-26 sm:$0x3] %vm237_vm12, %v335_v0   ;;  %1237 = vst.msk [vmem:[%s2669_s1 + $0x15] sm:$0xfc] %vm237_vm12, %v335_v0  }
  0x95   :  { %v424_v3 = vpop.permute.xlu1 %423  }
  0x96   :  { %v393_v2 = vpop.permute.xlu0 %392   ;;  %1259 = vst.msk [vmem:[%s2669_s1 + $0x20] ss:$-24 sm:$0x3] %vm394_vm13, %v424_v3   ;;  %1260 = vst.msk [vmem:[%s2669_s1 + $0x7] sm:$0xfc] %vm394_vm13, %v424_v3  }
  0x97   :  { %395 = vst.msk [vmem:[%s2669_s1] sm:$0xff] %vm394_vm13, %v393_v2  }
  0x9b   :  { %v458_v4 = vpop.permute.xlu0 %457  }
  0x9c   :  { %1268 = vst.msk [vmem:[%s2669_s1 + $0x28] ss:$-25 sm:$0x3] %vm394_vm13, %v458_v4   ;;  %1269 = vst.msk [vmem:[%s2669_s1 + $0xe] sm:$0xfc] %vm394_vm13, %v458_v4  }
  0x9d   :  { %v492_v5 = vpop.permute.xlu1 %491  }
  0x9e   :  { %1277 = vst.msk [vmem:[%s2669_s1 + $0x30] ss:$-26 sm:$0x3] %vm394_vm13, %v492_v5   ;;  %1278 = vst.msk [vmem:[%s2669_s1 + $0x15] sm:$0xfc] %vm394_vm13, %v492_v5  }
  0x9f   :  { %v513_v6 = vpop.permute.xlu0 %512  }
  0xa0   :  { %1283 = vst.msk [vmem:[%s2669_s1 + $0x38] ss:$-27 sm:$0x3] %vm394_vm13, %v513_v6   ;;  %1284 = vst.msk [vmem:[%s2669_s1 + $0x1c] sm:$0xc] %vm394_vm13, %v513_v6  }
  0xa1   :  { %v550_v7 = vpop.permute.xlu1 %549  }
  0xa2   :  { %552 = vst.msk [vmem:[%s2669_s1] sm:$0xff] %vm551_vm14, %v550_v7  }
  0xa3   :  { %v581_v8 = vpop.permute.xlu0 %580  }
  0xa4   :  { %1300 = vst.msk [vmem:[%s2669_s1 + $0x20] ss:$-24 sm:$0x3] %vm551_vm14, %v581_v8   ;;  %1301 = vst.msk [vmem:[%s2669_s1 + $0x7] sm:$0xfc] %vm551_vm14, %v581_v8  }
  0xa6   :  { %v615_v9 = vpop.permute.xlu1 %614  }
  0xa7   :  { %1309 = vst.msk [vmem:[%s2669_s1 + $0x28] ss:$-25 sm:$0x3] %vm551_vm14, %v615_v9   ;;  %1310 = vst.msk [vmem:[%s2669_s1 + $0xe] sm:$0xfc] %vm551_vm14, %v615_v9  }
  0xa9   :  { %v649_v10 = vpop.permute.xlu0 %648  }
  0xaa   :  { %1318 = vst.msk [vmem:[%s2669_s1 + $0x30] ss:$-26 sm:$0x3] %vm551_vm14, %v649_v10   ;;  %1319 = vst.msk [vmem:[%s2669_s1 + $0x15] sm:$0xfc] %vm551_vm14, %v649_v10   ;;  %v670_v11 = vpop.permute.xlu1 %669  }
  0xab   :  { %1324 = vst.msk [vmem:[%s2669_s1 + $0x38] ss:$-27 sm:$0x3] %vm551_vm14, %v670_v11   ;;  %1325 = vst.msk [vmem:[%s2669_s1 + $0x1c] sm:$0xc] %vm551_vm14, %v670_v11  }
  0xad   :  { %v707_v12 = vpop.permute.xlu0 %706  }
  0xae   :  { %709 = vst.msk [vmem:[%s2669_s1] sm:$0xff] %vm708_vm15, %v707_v12   ;;  %v738_v13 = vpop.permute.xlu1 %737  }
  0xaf   :  { %1341 = vst.msk [vmem:[%s2669_s1 + $0x20] ss:$-24 sm:$0x3] %vm708_vm15, %v738_v13   ;;  %1342 = vst.msk [vmem:[%s2669_s1 + $0x7] sm:$0xfc] %vm708_vm15, %v738_v13  }
  0xb3   :  { %v772_v14 = vpop.permute.xlu0 %771  }
  0xb4   :  { %1350 = vst.msk [vmem:[%s2669_s1 + $0x28] ss:$-25 sm:$0x3] %vm708_vm15, %v772_v14   ;;  %1351 = vst.msk [vmem:[%s2669_s1 + $0xe] sm:$0xfc] %vm708_vm15, %v772_v14  }
  0xb5   :  { %v806_v15 = vpop.permute.xlu1 %805  }
  0xb6   :  { %1359 = vst.msk [vmem:[%s2669_s1 + $0x30] ss:$-26 sm:$0x3] %vm708_vm15, %v806_v15   ;;  %1360 = vst.msk [vmem:[%s2669_s1 + $0x15] sm:$0xfc] %vm708_vm15, %v806_v15  }
  0xb7   :  { %v827_v16 = vpop.permute.xlu0 %826  }
  0xb8   :  { %1365 = vst.msk [vmem:[%s2669_s1 + $0x38] ss:$-27 sm:$0x3] %vm708_vm15, %v827_v16   ;;  %1366 = vst.msk [vmem:[%s2669_s1 + $0x1c] sm:$0xc] %vm708_vm15, %v827_v16  }
  0xb9   :  { %v864_v17 = vpop.permute.xlu1 %863  }
  0xba   :  { %866 = vst.msk [vmem:[%s2669_s1] sm:$0xff] %vm865_vm0, %v864_v17  }
  0xbb   :  { %v895_v18 = vpop.permute.xlu0 %894  }
  0xbc   :  { %1382 = vst.msk [vmem:[%s2669_s1 + $0x20] ss:$-24 sm:$0x3] %vm865_vm0, %v895_v18   ;;  %1383 = vst.msk [vmem:[%s2669_s1 + $0x7] sm:$0xfc] %vm865_vm0, %v895_v18  }
  0xbe   :  { %v929_v19 = vpop.permute.xlu1 %928  }
  0xbf   :  { %1391 = vst.msk [vmem:[%s2669_s1 + $0x28] ss:$-25 sm:$0x3] %vm865_vm0, %v929_v19   ;;  %1392 = vst.msk [vmem:[%s2669_s1 + $0xe] sm:$0xfc] %vm865_vm0, %v929_v19  }
  0xc0   :  { %v963_v20 = vpop.permute.xlu0 %962  }
  0xc1   :  { %1400 = vst.msk [vmem:[%s2669_s1 + $0x30] ss:$-26 sm:$0x3] %vm865_vm0, %v963_v20   ;;  %1401 = vst.msk [vmem:[%s2669_s1 + $0x15] sm:$0xfc] %vm865_vm0, %v963_v20  }
  0xc2   :  { %v984_v21 = vpop.permute.xlu1 %983  }
  0xc3   :  { %1406 = vst.msk [vmem:[%s2669_s1 + $0x38] ss:$-27 sm:$0x3] %vm865_vm0, %v984_v21   ;;  %1407 = vst.msk [vmem:[%s2669_s1 + $0x1c] sm:$0xc] %vm865_vm0, %v984_v21  }
  0xc4   :  { %v1021_v22 = vpop.permute.xlu0 %1020  }
  0xc5   :  { %1023 = vst.msk [vmem:[%s2669_s1] sm:$0xff] %vm1022_vm1, %v1021_v22  }
  0xc6   :  { %v1052_v23 = vpop.permute.xlu1 %1051  }
  0xc7   :  { %1423 = vst.msk [vmem:[%s2669_s1 + $0x20] ss:$-24 sm:$0x3] %vm1022_vm1, %v1052_v23   ;;  %1424 = vst.msk [vmem:[%s2669_s1 + $0x7] sm:$0xfc] %vm1022_vm1, %v1052_v23  }
  0xc8   :  { %v1086_v24 = vpop.permute.xlu0 %1085  }
  0xc9   :  { %1432 = vst.msk [vmem:[%s2669_s1 + $0x28] ss:$-25 sm:$0x3] %vm1022_vm1, %v1086_v24   ;;  %1433 = vst.msk [vmem:[%s2669_s1 + $0xe] sm:$0xfc] %vm1022_vm1, %v1086_v24  }
  0xcc   :  { %v1141_v26 = vpop.permute.xlu0 %1140  }
  0xcd   :  { %v1120_v25 = vpop.permute.xlu1 %1119   ;;  %1447 = vst.msk [vmem:[%s2669_s1 + $0x38] ss:$-27 sm:$0x3] %vm1022_vm1, %v1141_v26   ;;  %1448 = vst.msk [vmem:[%s2669_s1 + $0x1c] sm:$0xc] %vm1022_vm1, %v1141_v26  }
  0xce   :  { %1441 = vst.msk [vmem:[%s2669_s1 + $0x30] ss:$-26 sm:$0x3] %vm1022_vm1, %v1120_v25   ;;  %1442 = vst.msk [vmem:[%s2669_s1 + $0x15] sm:$0xfc] %vm1022_vm1, %v1120_v25  }

// kernel: custom-call
= control target key start
LH: loop header
LB: loop body
LE: loop exit
PB: predicated region body
PF: predicated region fallthrough
CT: control target
= control target key end

     0   :  { %s6_s0 = inlined_call_operand.vmem [shape: bf16[4608,2,2,4], index: 0, kind: output, shape index: {}]  }

// kernel: dcnv2_forward.1
= control target key start
LH: loop header
LB: loop body
LE: loop exit
PB: predicated region body
PF: predicated region fallthrough
CT: control target
= control target key end

     0   :  { %s1013_s18 = smov 0   ;;  %s1192_s0 = inlined_call_operand.vmem [shape: bf16[512,144], index: 0, kind: input, shape index: {}]   ;;  %s1193_s1 = inlined_call_operand.vmem [shape: bf16[512,36], index: 1, kind: input, shape index: {}]   ;;  %s1194_s2 = inlined_call_operand.vmem [shape: bf16[36,144], index: 2, kind: input, shape index: {}]   ;;  %s1195_s3 = inlined_call_operand.vmem [shape: bf16[144,128], index: 3, kind: input, shape index: {}]   ;;  %s1196_s4 = inlined_call_operand.vmem [shape: f32[1,128], index: 4, kind: input, shape index: {}]   ;;  %s1197_s5 = inlined_call_operand.vmem [shape: f32[512,128], index: 5, kind: output, shape index: {}]  }
   0x1 LB: > { %s866_s19 = sadd.s32 4294967295, %s980_s18   ;;  %p870_p0 = scmp.ge.s32.totalorder %s980_s18, 1  ;;  %s980_s18 = sphi %s1013_s18, %s15_s18  }
   0x2   : > { %p200_p1 = scmp.lt.s32.totalorder %s980_s18, 5 }
   0x4   : > { %p201_p2 = pnand %p870_p0, %p200_p1 }
   0x5   : > { %v949_v0 = vld [vmem:[%s1194_s2 + $0x4] ss:$8 sps:$4 sm:$0xff] (!%p201_p2)   ;;  %v951_v1 = vld [vmem:[%s1194_s2] ss:$8 sps:$4 sm:$0xff] (!%p201_p2)   ;;  %v982_v2 = vmov (!%p201_p2), 0   ;;  %s871_s24 = sshll.u32 (!%p201_p2), %s866_s19, 4 }
   0x6   : > { %204 = sbr.rel (%p201_p2) target bundleno = 512 (0x200), region = 40  ;;  %404 = vmatprep.mubr.bf16.mxu0 (!%p201_p2), %v982_v2  ;;  %922 = vmatprep.subr.bf16.mxu1 (!%p201_p2), %v982_v2  ;;  %v952_v3 = vld [vmem:[%s1194_s2 + $0x14] ss:$8 sps:$4 sm:$0xff] (!%p201_p2)   ;;  %v954_v4 = vld [vmem:[%s1194_s2 + $0x10] ss:$8 sps:$4 sm:$0xff] (!%p201_p2)   ;;  %p235_p3 = scmp.lt.s32.totalorder (!%p201_p2), %s871_s24, 63 }
   0x7   : > { %372 = vmatprep.subr.bf16.mxu0 (!%p201_p2), %v949_v0  ;;  %v274_v5 = vld [vmem:[%s1194_s2 + $0x20] sm:$0x33] (!%p201_p2)  ;;  %vm365_vm0 = vcmask (!%p201_p2), 1041408   ;;  %v966_v10 = vld [vmem:[%s1195_s3 + $0x8] sm:$0xff] (!%p201_p2)   ;;  %vm340_vm1 = vcmask (!%p201_p2), 293888   ;;  %v967_v12 = vld [vmem:[%s1195_s3 + $0x10] sm:$0xff] (!%p201_p2)  }
   0x8   : > { %373 = vmatpush1.bf16.msra.mxu0 (!%p201_p2), %v951_v1  ;;  %v890_v6 = vcombine.low (!%p201_p2), %v274_v5, %v274_v5  ;;  %v965_v7 = vld [vmem:[%s1195_s3] sm:$0xff] (!%p201_p2)   ;;  %v891_v8 = vcombine.high (!%p201_p2), %v274_v5, %v274_v5  ;;  %v968_v13 = vld [vmem:[%s1195_s3 + $0x18] sm:$0xff] (!%p201_p2)   ;;  %v970_v16 = vld [vmem:[%s1195_s3 + $0x28] sm:$0xff] (!%p201_p2)   ;;  %vm660_vm2 = vcmask (!%p201_p2), 130048  }
   0x9   : > { %374 = vmatprep.subr.bf16.mxu0 (!%p201_p2), %v952_v3  ;;  %931 = vmatpush1.bf16.msra.mxu1 (!%p201_p2), %v965_v7  ;;  %v969_v15 = vld [vmem:[%s1195_s3 + $0x20] sm:$0xff] (!%p201_p2)   ;;  %v971_v18 = vld [vmem:[%s1195_s3 + $0x30] sm:$0xff] (!%p201_p2)   ;;  %v972_v24 = vld [vmem:[%s1195_s3 + $0x38] sm:$0xff] (!%p201_p2)  }
   0xa   : > { %923 = vmatprep.subr.bf16.mxu1 (!%p201_p2), %v982_v2  ;;  %v367_v9 = vsel (!%p201_p2), %vm365_vm0, %v890_v6, 0  ;;  %v973_v25 = vld [vmem:[%s1195_s3 + $0x40] sm:$0xff] (!%p201_p2)  }
   0xc   : > { %375 = vmatpush1.bf16.msra.mxu0 (!%p201_p2), %v954_v4 }
   0xd   : > { %s1199_s24 = smov (!%p235_p3, %s871_s24), 63  ;;  %892 = vmatprep.subr.msk.bf16.mxu0 %vm365_vm0, %v891_v8  ;;  %932 = vmatpush1.bf16.msra.mxu1 %v966_v10 }
   0xe   : > { %s875_s8 = sshll.u32 %s1199_s24, 2  ;;  %924 = vmatprep.subr.bf16.mxu1 %v982_v2  ;;  %s921_s30 = sshll.u32 %s1199_s24, 3 }
   0xf   : > { %s1051_s13 = scalar_lea.vmem %s1193_s1, %s875_s8  ;;  %s1119_s8 = scalar_lea.vmem %s1192_s0, %s921_s30 }
  0x10   : > { %v957_v11 = vld [vmem:[%s1051_s13] sm:$0xff]   ;;  %377 = vmatpush1.bf16.msra.mxu0 %v367_v9  ;;  %v958_v14 = vld [vmem:[%s1051_s13 + $0x8] sm:$0xff]   ;;  %v959_v17 = vld [vmem:[%s1051_s13 + $0x10] sm:$0xff]  }
  0x11   : > { %685 = vmatprep.subr.bf16.mxu0 %v982_v2  ;;  %933 = vmatpush1.bf16.msra.mxu1 %v967_v12  ;;  %v960_v19 = vld [vmem:[%s1051_s13 + $0x18] sm:$0xff]   ;;  %v961_v20 = vld [vmem:[%s1051_s13 + $0x20] sm:$0xff]   ;;  %v962_v21 = vld [vmem:[%s1051_s13 + $0x28] sm:$0xff]  }
  0x12   : > { %925 = vmatprep.subr.bf16.mxu1 %v982_v2  ;;  %v963_v22 = vld [vmem:[%s1051_s13 + $0x30] sm:$0xff]   ;;  %v964_v23 = vld [vmem:[%s1051_s13 + $0x38] sm:$0xff]   ;;  %v485_v26 = vld [vmem:[%s1119_s8] sm:$0xff]  ;;  %s1155_s13 = scalar_lea.vmem %s1197_s5, %s921_s30 }
  0x13   : > { %893 = vmatmul.mubr.msk.bf16.vlgmr.msra.gmra.mrb[0].mxu0 %vm340_vm1, %v957_v11  ;;  %v486_v27 = vld [vmem:[%s1119_s8 + $0x8] sm:$0xff]  ;;  %v501_v28 = vunpack.c.l.bf16 %v485_v26  ;;  %v502_v31 = vunpack.c.h.bf16 %v485_v26  ;;  %v487_v40 = vld [vmem:[%s1119_s8 + $0x10] sm:$0xff]  ;;  %v488_v41 = vld [vmem:[%s1119_s8 + $0x18] sm:$0xff] }
  0x14   : > { %414 = vmatprep.mubr.bf16.mxu0 %v982_v2  ;;  %686 = vmatpush1.bf16.msra.mxu0 %v965_v7  ;;  %v503_v29 = vunpack.c.l.bf16 %v486_v27  ;;  %v504_v32 = vunpack.c.h.bf16 %v486_v27  ;;  %v505_v44 = vunpack.c.l.bf16 %v487_v40  ;;  %v507_v45 = vunpack.c.l.bf16 %v488_v41  ;;  %v489_v56 = vld [vmem:[%s1119_s8 + $0x20] sm:$0xff]  ;;  %v490_v57 = vld [vmem:[%s1119_s8 + $0x28] sm:$0xff]  ;;  %v491_v8 = vld [vmem:[%s1119_s8 + $0x30] sm:$0xff] }
  0x15   : > { %687 = vmatprep.subr.bf16.mxu0 %v982_v2  ;;  %934 = vmatpush1.bf16.msra.mxu1 %v968_v13  ;;  %v506_v47 = vunpack.c.h.bf16 %v487_v40  ;;  %v508_v48 = vunpack.c.h.bf16 %v488_v41  ;;  %v509_v60 = vunpack.c.l.bf16 %v489_v56  ;;  %v511_v61 = vunpack.c.l.bf16 %v490_v57  ;;  %v492_v9 = vld [vmem:[%s1119_s8 + $0x38] sm:$0xff]  ;;  %v495_v40 = vld [vmem:[%s1119_s8 + $0x50] sm:$0xff] }
  0x16   : > { %926 = vmatprep.subr.bf16.mxu1 %v982_v2  ;;  %v510_v63 = vunpack.c.h.bf16 %v489_v56  ;;  %v512_v0 = vunpack.c.h.bf16 %v490_v57  ;;  %v496_v41 = vld [vmem:[%s1119_s8 + $0x58] sm:$0xff]  ;;  %v497_v56 = vld [vmem:[%s1119_s8 + $0x60] sm:$0xff]  ;;  %v498_v57 = vld [vmem:[%s1119_s8 + $0x68] sm:$0xff] }
  0x18   : > { %688 = vmatpush1.bf16.msra.mxu0 %v966_v10 }
  0x19   : > { %689 = vmatprep.subr.bf16.mxu0 %v982_v2  ;;  %935 = vmatpush1.bf16.msra.mxu1 %v969_v15 }
  0x1a   : > { %927 = vmatprep.subr.bf16.mxu1 %v982_v2 }
  0x1b   : > { %894 = vmatmul.mubr.msk.bf16.gmra.mrb[4].mxu0 %vm340_vm1, %v958_v14 }
  0x1c   : > { %424 = vmatprep.mubr.bf16.mxu0 %v982_v2  ;;  %690 = vmatpush1.bf16.msra.mxu0 %v967_v12  ;;  %v513_v12 = vunpack.c.l.bf16 %v491_v8 }
  0x1d   : > { %691 = vmatprep.subr.bf16.mxu0 %v982_v2  ;;  %936 = vmatpush1.bf16.msra.mxu1 %v970_v16 }
  0x1e   : > { %928 = vmatprep.subr.bf16.mxu1 %v982_v2 }
  0x20   : > { %692 = vmatpush1.bf16.msra.mxu0 %v968_v13  ;;  %v515_v13 = vunpack.c.l.bf16 %v492_v9 }
  0x21   : > { %693 = vmatprep.subr.bf16.mxu0 %v982_v2  ;;  %937 = vmatpush1.bf16.msra.mxu1 %v971_v18 }
  0x22   : > { %929 = vmatprep.subr.bf16.mxu1 %v982_v2 }
  0x23   : > { %895 = vmatmul.mubr.msk.bf16.gmra.mrb[8].mxu0 %vm340_vm1, %v959_v17 }
  0x24   : > { %434 = vmatprep.mubr.bf16.mxu0 %v982_v2  ;;  %694 = vmatpush1.bf16.msra.mxu0 %v969_v15  ;;  %v514_v15 = vunpack.c.h.bf16 %v491_v8  ;;  %v499_v8 = vld [vmem:[%s1119_s8 + $0x70] sm:$0xff] }
  0x25   : > { %695 = vmatprep.subr.bf16.mxu0 %v982_v2  ;;  %938 = vmatpush1.bf16.msra.mxu1 %v972_v24 }
  0x26   : > { %930 = vmatprep.subr.bf16.mxu1 %v982_v2 }
  0x28   : > { %696 = vmatpush1.bf16.msra.mxu0 %v970_v16  ;;  %v516_v16 = vunpack.c.h.bf16 %v492_v9  ;;  %v500_v9 = vld [vmem:[%s1119_s8 + $0x78] sm:$0xff] }
  0x29   : > { %697 = vmatprep.subr.bf16.mxu0 %v982_v2  ;;  %939 = vmatpush1.bf16.msra.mxu1 %v973_v25 }
  0x2b   : > { %896 = vmatmul.mubr.msk.bf16.gmra.mrb[12].mxu0 %vm340_vm1, %v960_v19 }
  0x2c   : > { %444 = vmatprep.mubr.bf16.mxu0 %v982_v2  ;;  %698 = vmatpush1.bf16.msra.mxu0 %v971_v18 }
  0x2d   : > { %699 = vmatprep.subr.bf16.mxu0 %v982_v2 }
  0x30   : > { %700 = vmatpush1.bf16.msra.mxu0 %v972_v24  ;;  %v493_v24 = vld [vmem:[%s1119_s8 + $0x40] sm:$0xff] }
  0x31   : > { %701 = vmatprep.subr.bf16.mxu0 %v982_v2 }
  0x33   : > { %897 = vmatmul.mubr.msk.bf16.gmra.mrb[16].mxu0 %vm340_vm1, %v961_v20 }
  0x34   : > { %454 = vmatprep.mubr.bf16.mxu0 %v982_v2  ;;  %702 = vmatpush1.bf16.msra.mxu0 %v973_v25  ;;  %v494_v25 = vld [vmem:[%s1119_s8 + $0x48] sm:$0xff] }
  0x3b   : > { %898 = vmatmul.mubr.msk.bf16.gmra.mrb[20].mxu0 %vm340_vm1, %v962_v21 }
  0x3c   : > { %464 = vmatprep.mubr.bf16.mxu0 %v982_v2 }
  0x43   : > { %899 = vmatmul.mubr.msk.bf16.gmra.mrb[24].mxu0 %vm340_vm1, %v963_v22 }
  0x44   : > { %474 = vmatprep.mubr.bf16.mxu0 %v982_v2 }
  0x4b   : > { %900 = vmatmul.mubr.msk.bf16.gmra.mrb[28].mxu0 %vm340_vm1, %v964_v23 }
  0xe6   : > { %v406_v30 = vpop.f32.mrb[0].mxu0 }
  0xe7   : > { %v408_v33 = vpop.f32.mrb[1].mxu0  ;;  %v533_v35 = vmul.f32 %v501_v28, %v406_v30  ;;  %v517_v28 = vunpack.c.l.bf16 %v493_v24 }
  0xe8   : > { %v410_v34 = vpop.f32.mrb[2].mxu0  ;;  %v534_v38 = vmul.f32 %v502_v31, %v408_v33  ;;  %v518_v31 = vunpack.c.h.bf16 %v493_v24 }
  0xe9   : > { %v535_v36 = vmul.f32 %v503_v29, %v410_v34  ;;  %v412_v37 = vpop.f32.mrb[3].mxu0  ;;  %v519_v29 = vunpack.c.l.bf16 %v494_v25 }
  0xea   : > { %v536_v39 = vmul.f32 %v504_v32, %v412_v37  ;;  %v520_v32 = vunpack.c.h.bf16 %v494_v25 }
  0xeb   : > { %v565_v42 = vpack.c.bf16 %v535_v36, %v533_v35 }
  0xec   : > { %v566_v43 = vpack.c.bf16 %v536_v39, %v534_v38 }
  0xee   : > { %v416_v46 = vpop.f32.mrb[4].mxu0  ;;  %911 = vmatprep.mubr.msk.bf16.mxu0 %vm660_vm2, %v566_v43 }
  0xef   : > { %v418_v49 = vpop.f32.mrb[5].mxu0  ;;  %718 = vmatmul.mubr.bf16.vlgmr.msra.gmra.mrb[32].mxu0 %v565_v42  ;;  %v537_v51 = vmul.f32 %v505_v44, %v416_v46  ;;  %v521_v44 = vunpack.c.l.bf16 %v495_v40 }
  0xf0   : > { %v420_v50 = vpop.f32.mrb[6].mxu0  ;;  %v538_v54 = vmul.f32 %v506_v47, %v418_v49  ;;  %v522_v47 = vunpack.c.h.bf16 %v495_v40 }
  0xf1   : > { %v539_v52 = vmul.f32 %v507_v45, %v420_v50  ;;  %v422_v53 = vpop.f32.mrb[7].mxu0  ;;  %v523_v45 = vunpack.c.l.bf16 %v496_v41 }
  0xf2   : > { %v540_v55 = vmul.f32 %v508_v48, %v422_v53  ;;  %v524_v48 = vunpack.c.h.bf16 %v496_v41 }
  0xf3   : > { %v567_v58 = vpack.c.bf16 %v539_v52, %v537_v51 }
  0xf4   : > { %v568_v59 = vpack.c.bf16 %v540_v55, %v538_v54 }
  0xf6   : > { %v426_v62 = vpop.f32.mrb[8].mxu0  ;;  %912 = vmatprep.mubr.msk.bf16.mxu1 %vm660_vm2, %v568_v59 }
  0xf7   : > { %v428_v1 = vpop.f32.mrb[9].mxu0  ;;  %726 = vmatmul.mubr.bf16.vlgmr.msra.gmra.mrb[0].mxu1 %v567_v58  ;;  %v541_v3 = vmul.f32 %v509_v60, %v426_v62  ;;  %v525_v60 = vunpack.c.l.bf16 %v497_v56 }
  0xf8   : > { %v430_v2 = vpop.f32.mrb[10].mxu0  ;;  %v542_v6 = vmul.f32 %v510_v63, %v428_v1  ;;  %v526_v63 = vunpack.c.h.bf16 %v497_v56 }
  0xf9   : > { %v543_v4 = vmul.f32 %v511_v61, %v430_v2  ;;  %v432_v5 = vpop.f32.mrb[11].mxu0  ;;  %v527_v61 = vunpack.c.l.bf16 %v498_v57 }
  0xfa   : > { %v544_v7 = vmul.f32 %v512_v0, %v432_v5  ;;  %v528_v0 = vunpack.c.h.bf16 %v498_v57 }
  0xfb   : > { %v569_v10 = vpack.c.bf16 %v543_v4, %v541_v3 }
  0xfc   : > { %v570_v11 = vpack.c.bf16 %v544_v7, %v542_v6 }
  0xfe   : > { %v436_v14 = vpop.f32.mrb[12].mxu0  ;;  %913 = vmatprep.mubr.msk.bf16.mxu1 %vm660_vm2, %v570_v11 }
  0xff   : > { %v438_v17 = vpop.f32.mrb[13].mxu0  ;;  %734 = vmatmul.mubr.bf16.gmra.mrb[4].mxu1 %v569_v10  ;;  %v545_v19 = vmul.f32 %v513_v12, %v436_v14  ;;  %v529_v12 = vunpack.c.l.bf16 %v499_v8 }
 0x100   : > { %v440_v18 = vpop.f32.mrb[14].mxu0  ;;  %v546_v22 = vmul.f32 %v514_v15, %v438_v17  ;;  %v530_v15 = vunpack.c.h.bf16 %v499_v8 }
 0x101   : > { %v547_v20 = vmul.f32 %v515_v13, %v440_v18  ;;  %v442_v21 = vpop.f32.mrb[15].mxu0  ;;  %v531_v13 = vunpack.c.l.bf16 %v500_v9 }
 0x102   : > { %v548_v23 = vmul.f32 %v516_v16, %v442_v21  ;;  %v532_v16 = vunpack.c.h.bf16 %v500_v9 }
 0x103   : > { %v571_v26 = vpack.c.bf16 %v547_v20, %v545_v19 }
 0x104   : > { %v572_v27 = vpack.c.bf16 %v548_v23, %v546_v22 }
 0x106   : > { %v446_v30 = vpop.f32.mrb[16].mxu0  ;;  %914 = vmatprep.mubr.msk.bf16.mxu1 %vm660_vm2, %v572_v27 }
 0x107   : > { %v448_v33 = vpop.f32.mrb[17].mxu0  ;;  %742 = vmatmul.mubr.bf16.gmra.mrb[8].mxu1 %v571_v26  ;;  %v549_v35 = vmul.f32 %v517_v28, %v446_v30  ;;  %v1148_v26 = vld [vmem:[%s1196_s4] ss:$0 sm:$0xff] }
 0x108   : > { %v450_v34 = vpop.f32.mrb[18].mxu0  ;;  %v550_v38 = vmul.f32 %v518_v31, %v448_v33 }
 0x109   : > { %v551_v36 = vmul.f32 %v519_v29, %v450_v34  ;;  %v452_v37 = vpop.f32.mrb[19].mxu0 }
 0x10a   : > { %v552_v39 = vmul.f32 %v520_v32, %v452_v37 }
 0x10b   : > { %v573_v42 = vpack.c.bf16 %v551_v36, %v549_v35 }
 0x10c   : > { %v574_v43 = vpack.c.bf16 %v552_v39, %v550_v38 }
 0x10e   : > { %v456_v46 = vpop.f32.mrb[20].mxu0  ;;  %915 = vmatprep.mubr.msk.bf16.mxu1 %vm660_vm2, %v574_v43 }
 0x10f   : > { %v458_v49 = vpop.f32.mrb[21].mxu0  ;;  %750 = vmatmul.mubr.bf16.gmra.mrb[12].mxu1 %v573_v42  ;;  %v553_v51 = vmul.f32 %v521_v44, %v456_v46 }
 0x110   : > { %v460_v50 = vpop.f32.mrb[22].mxu0  ;;  %v554_v54 = vmul.f32 %v522_v47, %v458_v49 }
 0x111   : > { %v555_v52 = vmul.f32 %v523_v45, %v460_v50  ;;  %v462_v53 = vpop.f32.mrb[23].mxu0 }
 0x112   : > { %v556_v55 = vmul.f32 %v524_v48, %v462_v53 }
 0x113   : > { %v575_v58 = vpack.c.bf16 %v555_v52, %v553_v51 }
 0x114   : > { %v576_v59 = vpack.c.bf16 %v556_v55, %v554_v54 }
 0x116   : > { %v466_v62 = vpop.f32.mrb[24].mxu0  ;;  %916 = vmatprep.mubr.msk.bf16.mxu1 %vm660_vm2, %v576_v59 }
 0x117   : > { %v468_v1 = vpop.f32.mrb[25].mxu0  ;;  %758 = vmatmul.mubr.bf16.gmra.mrb[16].mxu1 %v575_v58  ;;  %v557_v3 = vmul.f32 %v525_v60, %v466_v62 }
 0x118   : > { %v470_v2 = vpop.f32.mrb[26].mxu0  ;;  %v558_v6 = vmul.f32 %v526_v63, %v468_v1 }
 0x119   : > { %v559_v4 = vmul.f32 %v527_v61, %v470_v2  ;;  %v472_v5 = vpop.f32.mrb[27].mxu0 }
 0x11a   : > { %v560_v7 = vmul.f32 %v528_v0, %v472_v5 }
 0x11b   : > { %v577_v10 = vpack.c.bf16 %v559_v4, %v557_v3 }
 0x11c   : > { %v578_v11 = vpack.c.bf16 %v560_v7, %v558_v6 }
 0x11e   : > { %v476_v14 = vpop.f32.mrb[28].mxu0  ;;  %917 = vmatprep.mubr.msk.bf16.mxu1 %vm660_vm2, %v578_v11 }
 0x11f   : > { %v478_v17 = vpop.f32.mrb[29].mxu0  ;;  %766 = vmatmul.mubr.bf16.gmra.mrb[20].mxu1 %v577_v10  ;;  %v561_v19 = vmul.f32 %v529_v12, %v476_v14 }
 0x120   : > { %v480_v18 = vpop.f32.mrb[30].mxu0  ;;  %v562_v22 = vmul.f32 %v530_v15, %v478_v17 }
 0x121   : > { %v563_v20 = vmul.f32 %v531_v13, %v480_v18  ;;  %v482_v21 = vpop.f32.mrb[31].mxu0 }
 0x122   : > { %v564_v23 = vmul.f32 %v532_v16, %v482_v21 }
 0x123   : > { %v579_v24 = vpack.c.bf16 %v563_v20, %v561_v19 }
 0x124   : > { %v580_v25 = vpack.c.bf16 %v564_v23, %v562_v22 }
 0x126   : > { %918 = vmatprep.mubr.msk.bf16.mxu1 %vm660_vm2, %v580_v25 }
 0x127   : > { %774 = vmatmul.mubr.bf16.gmra.mrb[24].mxu1 %v579_v24 }
 0x1c2   : > { %v719_v27 = vpop.f32.mrb[32].mxu0 }
 0x1c3   : > { %v720_v28 = vadd.f32 %v1148_v26, %v719_v27  ;;  %v721_v29 = vpop.f32.mrb[33].mxu0 }
 0x1c4   : > { %v722_v30 = vpop.f32.mrb[34].mxu0 }
 0x1c5   : > { %782 = vst [vmem:[%s1155_s13] sm:$0xff] %v720_v28  ;;  %v723_v31 = vadd.f32 %v1148_v26, %v722_v30  ;;  %v724_v32 = vpop.f32.mrb[35].mxu0 }
 0x1c7   : > { %783 = vst [vmem:[%s1155_s13 + $0x8] sm:$0xff] %v723_v31 }
 0x1ca   : > { %v727_v33 = vpop.f32.mrb[0].mxu1 }
 0x1cb   : > { %v728_v34 = vadd.f32 %v1148_v26, %v727_v33  ;;  %v729_v35 = vpop.f32.mrb[1].mxu1 }
 0x1cc   : > { %v730_v36 = vpop.f32.mrb[2].mxu1 }
 0x1cd   : > { %784 = vst [vmem:[%s1155_s13 + $0x10] sm:$0xff] %v728_v34  ;;  %v731_v37 = vadd.f32 %v1148_v26, %v730_v36  ;;  %v732_v38 = vpop.f32.mrb[3].mxu1 }
 0x1cf   : > { %785 = vst [vmem:[%s1155_s13 + $0x18] sm:$0xff] %v731_v37 }
 0x1d2   : > { %v735_v39 = vpop.f32.mrb[4].mxu1 }
 0x1d3   : > { %v736_v40 = vadd.f32 %v1148_v26, %v735_v39  ;;  %v737_v41 = vpop.f32.mrb[5].mxu1 }
 0x1d4   : > { %v738_v42 = vpop.f32.mrb[6].mxu1 }
 0x1d5   : > { %786 = vst [vmem:[%s1155_s13 + $0x20] sm:$0xff] %v736_v40  ;;  %v739_v43 = vadd.f32 %v1148_v26, %v738_v42  ;;  %v740_v44 = vpop.f32.mrb[7].mxu1 }
 0x1d7   : > { %787 = vst [vmem:[%s1155_s13 + $0x28] sm:$0xff] %v739_v43 }
 0x1da   : > { %v743_v45 = vpop.f32.mrb[8].mxu1 }
 0x1db   : > { %v744_v46 = vadd.f32 %v1148_v26, %v743_v45  ;;  %v745_v47 = vpop.f32.mrb[9].mxu1 }
 0x1dc   : > { %v746_v48 = vpop.f32.mrb[10].mxu1 }
 0x1dd   : > { %788 = vst [vmem:[%s1155_s13 + $0x30] sm:$0xff] %v744_v46  ;;  %v747_v49 = vadd.f32 %v1148_v26, %v746_v48  ;;  %v748_v50 = vpop.f32.mrb[11].mxu1 }
 0x1df   : > { %789 = vst [vmem:[%s1155_s13 + $0x38] sm:$0xff] %v747_v49 }
 0x1e2   : > { %v751_v51 = vpop.f32.mrb[12].mxu1 }
 0x1e3   : > { %v752_v52 = vadd.f32 %v1148_v26, %v751_v51  ;;  %v753_v53 = vpop.f32.mrb[13].mxu1 }
 0x1e4   : > { %v754_v54 = vpop.f32.mrb[14].mxu1 }
 0x1e5   : > { %790 = vst [vmem:[%s1155_s13 + $0x40] sm:$0xff] %v752_v52  ;;  %v755_v55 = vadd.f32 %v1148_v26, %v754_v54  ;;  %v756_v56 = vpop.f32.mrb[15].mxu1 }
 0x1e7   : > { %791 = vst [vmem:[%s1155_s13 + $0x48] sm:$0xff] %v755_v55 }
 0x1ea   : > { %v759_v57 = vpop.f32.mrb[16].mxu1 }
 0x1eb   : > { %v760_v58 = vadd.f32 %v1148_v26, %v759_v57  ;;  %v761_v59 = vpop.f32.mrb[17].mxu1 }
 0x1ec   : > { %v762_v60 = vpop.f32.mrb[18].mxu1 }
 0x1ed   : > { %792 = vst [vmem:[%s1155_s13 + $0x50] sm:$0xff] %v760_v58  ;;  %v763_v61 = vadd.f32 %v1148_v26, %v762_v60  ;;  %v764_v62 = vpop.f32.mrb[19].mxu1 }
 0x1ef   : > { %793 = vst [vmem:[%s1155_s13 + $0x58] sm:$0xff] %v763_v61 }
 0x1f2   : > { %v767_v63 = vpop.f32.mrb[20].mxu1 }
 0x1f3   : > { %v768_v0 = vadd.f32 %v1148_v26, %v767_v63  ;;  %v769_v1 = vpop.f32.mrb[21].mxu1 }
 0x1f4   : > { %v770_v2 = vpop.f32.mrb[22].mxu1 }
 0x1f5   : > { %794 = vst [vmem:[%s1155_s13 + $0x60] sm:$0xff] %v768_v0  ;;  %v771_v3 = vadd.f32 %v1148_v26, %v770_v2  ;;  %v772_v4 = vpop.f32.mrb[23].mxu1 }
 0x1f7   : > { %795 = vst [vmem:[%s1155_s13 + $0x68] sm:$0xff] %v771_v3 }
 0x1fa   : > { %v775_v5 = vpop.f32.mrb[24].mxu1 }
 0x1fb   : > { %v776_v6 = vadd.f32 %v1148_v26, %v775_v5  ;;  %v777_v7 = vpop.f32.mrb[25].mxu1 }
 0x1fc   : > { %v778_v8 = vpop.f32.mrb[26].mxu1 }
 0x1fd   : > { %796 = vst [vmem:[%s1155_s13 + $0x70] sm:$0xff] %v776_v6  ;;  %v779_v9 = vadd.f32 %v1148_v26, %v778_v8  ;;  %v780_v10 = vpop.f32.mrb[27].mxu1 }
 0x1ff   : > { %797 = vst [vmem:[%s1155_s13 + $0x78] sm:$0xff] %v779_v9 }
 0x200 PF: > { %s15_s18 = sadd.s32 1, %s980_s18  }
 0x201   : > { %p12_p4 = scmp.ge.s32.totalorder %s15_s18, 6  }
 0x203   :  { %14 = sbr.rel (!%p12_p4) target bundleno = 1 (0x1), region = 73 }

</bundles_post_ra>
